<compile_context>
chip_gen: v5e
topology: v5e:2x2
jax: 0.10.0
libtpu: 0.0.40
codegen_flags: <defaults>
</compile_context>

<pallas_src>
import functools

import jax
import jax.numpy as jnp
from jax.experimental import pallas as pl
from jax.experimental.pallas import tpu as pltpu

# ----------------------- synthetic (small) BERT+LoRA config -----------------
VOCAB = 128
HIDDEN = 32
NUM_LAYERS = 2
NUM_HEADS = 4
HEAD_DIM = HIDDEN // NUM_HEADS
INTERMEDIATE = 64
MAX_POS = 16
TYPE_VOCAB = 2
LORA_R = 4
LORA_ALPHA = 16
LORA_SCALE = LORA_ALPHA / LORA_R
LN_EPS = 1e-12

# MXU input dtype (weights + matmul activations). Accumulation / LN / softmax
# stay in f32 (v5e VPU has no bf16 elementwise path).
MXU_DTYPE = jnp.bfloat16


def _gelu(x):
    # TODO(synk): HF BERT default is exact erf-GELU; tanh approximation is used
    # here for guaranteed Mosaic lowering (~1e-3 match).
    return 0.5 * x * (1.0 + jnp.tanh(0.7978845608028654 * (x + 0.044715 * x * x * x)))


def _layernorm(x, g, b):
    mu = jnp.mean(x, axis=-1, keepdims=True)
    xc = x - mu
    var = jnp.mean(xc * xc, axis=-1, keepdims=True)
    return xc * jax.lax.rsqrt(var + LN_EPS) * g + b


# ------------------------------- fused forward kernel ------------------------
def _bert_forward_kernel(emb_ref, bias_ref, emb_ln_ref,
                         wqkv_ref, wo_ref, wi_ref, wf_ref,
                         bqkv_ref, bi_ref, lvec_ref,
                         mlm_w_ref, mlm_vec_ref, dec_w_ref, dec_b_ref,
                         o_ref, x_ref,
                         *, batch, seq, num_heads, head_dim):
    """One grid step == one encoder layer.  Layer 0 also runs the embedding
    LayerNorm; the last layer also runs the fused MLM head.  The hidden state
    stays resident in the x_ref VMEM scratch across grid steps."""
    layer = pl.program_id(0)
    hidden = num_heads * head_dim
    rows = batch * seq

    @pl.when(layer == 0)
    def _():
        x_ref[...] = _layernorm(emb_ref[...], emb_ln_ref[0:1, :], emb_ln_ref[1:2, :])

    x = x_ref[...]                                                      # (M, H) f32

    # Fused QKV projection; LoRA and the 1/sqrt(head_dim) query scale are
    # already folded into wqkv/bqkv at param-prep time.
    qkv = jnp.dot(x.astype(MXU_DTYPE), wqkv_ref[...],
                  preferred_element_type=jnp.float32) + bqkv_ref[...]   # (M, 3H)
    qkv3 = qkv.reshape(batch, seq, 3 * hidden)
    bias = bias_ref[...]                                                # (B, 1, S)

    # Multi-head attention: per head, batched over B with 3-D einsums; the
    # per-head contexts are concatenated and hit the MXU once with K=H below.
    # TODO(synk): at production sizes (12+ heads, 512x512 score tiles) move the
    # head loop onto a fori_loop / grid axis and use a head-major, 128-lane
    # aligned wqkv layout instead of this trace-time unroll with sub-128-lane
    # slices (unavoidable at toy H=32).
    ctx_heads = []
    for h in range(num_heads):
        c0 = h * head_dim
        qh = qkv3[:, :, c0:c0 + head_dim].astype(MXU_DTYPE)
        kh = qkv3[:, :, hidden + c0:hidden + c0 + head_dim].astype(MXU_DTYPE)
        vh = qkv3[:, :, 2 * hidden + c0:2 * hidden + c0 + head_dim].astype(MXU_DTYPE)
        s = jnp.einsum('bqd,bkd->bqk', qh, kh,
                       preferred_element_type=jnp.float32) + bias       # (B, S, S)
        s = s - jnp.max(s, axis=-1, keepdims=True)
        p = jnp.exp(s)
        p = p / jnp.sum(p, axis=-1, keepdims=True)                      # exact softmax
        ctx_heads.append(jnp.einsum('bqk,bkd->bqd', p.astype(MXU_DTYPE), vh,
                                    preferred_element_type=jnp.float32))
    ctx = jnp.concatenate(ctx_heads, axis=-1).reshape(rows, hidden)     # (M, H)

    # Single K=H output projection, residual + LN1.
    attn = jnp.dot(ctx.astype(MXU_DTYPE), wo_ref[...],
                   preferred_element_type=jnp.float32) + lvec_ref[0:1, :]
    h1 = _layernorm(attn + x, lvec_ref[1:2, :], lvec_ref[2:3, :])

    # FFN, residual + LN2.
    inter = _gelu(jnp.dot(h1.astype(MXU_DTYPE), wi_ref[...],
                          preferred_element_type=jnp.float32) + bi_ref[...])
    ffn = jnp.dot(inter.astype(MXU_DTYPE), wf_ref[...],
                  preferred_element_type=jnp.float32) + lvec_ref[3:4, :]
    out = _layernorm(ffn + h1, lvec_ref[4:5, :], lvec_ref[5:6, :])
    x_ref[...] = out

    @pl.when(layer == pl.num_programs(0) - 1)
    def _():
        # Fused MLM head: transform dense + GELU + LN + tied decoder.
        t = _gelu(jnp.dot(out.astype(MXU_DTYPE), mlm_w_ref[...],
                          preferred_element_type=jnp.float32) + mlm_vec_ref[0:1, :])
        t = _layernorm(t, mlm_vec_ref[1:2, :], mlm_vec_ref[2:3, :])
        o_ref[...] = jnp.dot(t.astype(MXU_DTYPE), dec_w_ref[...],
                             preferred_element_type=jnp.float32) + dec_b_ref[...]


# ------------------------------- parameters ----------------------------------
def init_params(key):
    keys = iter(jax.random.split(key, 256))

    def nrm(shape, std=0.02):
        return (std * jax.random.normal(next(keys), shape)).astype(jnp.float32)

    params = {
        "word_emb": nrm((VOCAB, HIDDEN)),
        "pos_emb": nrm((MAX_POS, HIDDEN)),
        "type_emb": nrm((TYPE_VOCAB, HIDDEN)),
        "emb_ln_g": jnp.ones((1, HIDDEN), jnp.float32),
        "emb_ln_b": jnp.zeros((1, HIDDEN), jnp.float32),
        "layers": [],
        "mlm_dense_w": nrm((HIDDEN, HIDDEN)),
        "mlm_dense_b": jnp.zeros((HIDDEN,), jnp.float32),
        "mlm_ln_g": jnp.ones((1, HIDDEN), jnp.float32),
        "mlm_ln_b": jnp.zeros((1, HIDDEN), jnp.float32),
        "mlm_bias": jnp.zeros((VOCAB,), jnp.float32),
    }
    for _ in range(NUM_LAYERS):
        layer = {
            "wq": nrm((HIDDEN, HIDDEN)), "bq": jnp.zeros((HIDDEN,), jnp.float32),
            "lora_a_q": nrm((HIDDEN, LORA_R)), "lora_b_q": nrm((LORA_R, HIDDEN)),
            "wk": nrm((HIDDEN, HIDDEN)), "bk": jnp.zeros((HIDDEN,), jnp.float32),
            "wv": nrm((HIDDEN, HIDDEN)), "bv": jnp.zeros((HIDDEN,), jnp.float32),
            "lora_a_v": nrm((HIDDEN, LORA_R)), "lora_b_v": nrm((LORA_R, HIDDEN)),
            "wo": nrm((HIDDEN, HIDDEN)), "bo": jnp.zeros((HIDDEN,), jnp.float32),
            "ln1_g": jnp.ones((1, HIDDEN), jnp.float32),
            "ln1_b": jnp.zeros((1, HIDDEN), jnp.float32),
            "wi": nrm((HIDDEN, INTERMEDIATE)),
            "bi": jnp.zeros((INTERMEDIATE,), jnp.float32),
            "wf": nrm((INTERMEDIATE, HIDDEN)),
            "bf": jnp.zeros((HIDDEN,), jnp.float32),
            "ln2_g": jnp.ones((1, HIDDEN), jnp.float32),
            "ln2_b": jnp.zeros((1, HIDDEN), jnp.float32),
        }
        params["layers"].append(layer)
    return params


def prepare_inference_params(params):
    """One-time param prep: fold LoRA into the base weights (exact), fold the
    1/sqrt(head_dim) scale into the query projection, fuse [Wq|Wk|Wv], pack the
    tiny per-layer vectors into 3 operands, stack all layers along a leading
    layer axis for the grid-over-layers kernel, cast matmul weights to bf16 and
    pre-transpose the tied decoder weight exactly once."""
    q_scale = 1.0 / (HEAD_DIM ** 0.5)
    wqkv, wo, wi, wf, bqkv, bi, lvec = [], [], [], [], [], [], []
    for layer in params["layers"]:
        wq = (layer["wq"] + LORA_SCALE * layer["lora_a_q"] @ layer["lora_b_q"]) * q_scale
        wv = layer["wv"] + LORA_SCALE * layer["lora_a_v"] @ layer["lora_b_v"]
        wqkv.append(jnp.concatenate([wq, layer["wk"], wv], axis=1))         # (H, 3H)
        bqkv.append(jnp.concatenate([layer["bq"] * q_scale, layer["bk"],
                                     layer["bv"]]).reshape(1, 3 * HIDDEN))
        wo.append(layer["wo"])
        wi.append(layer["wi"])
        wf.append(layer["wf"])
        bi.append(layer["bi"].reshape(1, INTERMEDIATE))
        lvec.append(jnp.concatenate([
            layer["bo"].reshape(1, HIDDEN), layer["ln1_g"], layer["ln1_b"],
            layer["bf"].reshape(1, HIDDEN), layer["ln2_g"], layer["ln2_b"]], axis=0))
    return {
        "word_emb": params["word_emb"],
        "pos_emb": params["pos_emb"],
        "type_emb": params["type_emb"],
        "emb_ln": jnp.concatenate([params["emb_ln_g"], params["emb_ln_b"]], axis=0),
        "wqkv": jnp.stack(wqkv).astype(MXU_DTYPE),        # (L, H, 3H)
        "wo": jnp.stack(wo).astype(MXU_DTYPE),            # (L, H, H)
        "wi": jnp.stack(wi).astype(MXU_DTYPE),            # (L, H, I)
        "wf": jnp.stack(wf).astype(MXU_DTYPE),            # (L, I, H)
        "bqkv": jnp.stack(bqkv),                          # (L, 1, 3H) f32
        "bi": jnp.stack(bi),                              # (L, 1, I)  f32
        "lvec": jnp.stack(lvec),                          # (L, 6, H)  f32
        "mlm_dense_w": params["mlm_dense_w"].astype(MXU_DTYPE),
        "mlm_vec": jnp.concatenate([params["mlm_dense_b"].reshape(1, HIDDEN),
                                    params["mlm_ln_g"], params["mlm_ln_b"]], axis=0),
        "decoder_w": params["word_emb"].T.astype(MXU_DTYPE),   # transposed exactly once
        "mlm_bias": params["mlm_bias"].reshape(1, VOCAB),
    }


# ------------------------------- forward pass ---------------------------------
def bert_lora_forward(prepped, input_ids, attention_mask):
    """== BertLoRAWithSelector.forward == self.bert_lora(input_ids, attention_mask)."""
    B, S = input_ids.shape
    M = B * S
    # Embedding gather (word + position + token_type) stays in JAX.
    # TODO(synk): token_type_ids are hard-coded to 0 like the reference call.
    emb = (prepped["word_emb"][input_ids]
           + prepped["pos_emb"][:S][None, :, :]
           + prepped["type_emb"][0][None, None, :]).reshape(M, HIDDEN)
    bias = ((1.0 - attention_mask.astype(jnp.float32)) * -10000.0).reshape(B, 1, S)

    kernel = functools.partial(_bert_forward_kernel, batch=B, seq=S,
                               num_heads=NUM_HEADS, head_dim=HEAD_DIM)

    def fixed(shape):
        n = len(shape)
        return pl.BlockSpec(shape, lambda l, n=n: (0,) * n)

    def per_layer(shape):
        n = len(shape)
        return pl.BlockSpec((None,) + shape, lambda l, n=n: (l,) + (0,) * n)

    # TODO(synk): at production sizes (H=768, S=512, VOCAB~30k) the full-array
    # fixed() specs must become tiled grids over rows / vocab / K (tile edges
    # multiples of 128 on v5e, 256 on v6e/v7x), with 'parallel' row/vocab axes
    # for v7x's two TensorCores and an explicit vmem_limit_bytes; the f32 tied
    # decoder weight alone cannot fit v7x's 64 MiB VMEM untiled.
    logits = pl.pallas_call(
        kernel,
        out_shape=jax.ShapeDtypeStruct((M, VOCAB), jnp.float32),
        grid=(NUM_LAYERS,),
        in_specs=[
            fixed((M, HIDDEN)),                     # emb (read on layer 0 only)
            fixed((B, 1, S)),                       # additive attention bias
            fixed((2, HIDDEN)),                     # emb LN [g; b]
            per_layer((HIDDEN, 3 * HIDDEN)),        # wqkv (LoRA + q-scale folded)
            per_layer((HIDDEN, HIDDEN)),            # wo
            per_layer((HIDDEN, INTERMEDIATE)),      # wi
            per_layer((INTERMEDIATE, HIDDEN)),      # wf
            per_layer((1, 3 * HIDDEN)),             # bqkv
            per_layer((1, INTERMEDIATE)),           # bi
            per_layer((6, HIDDEN)),                 # [bo; ln1_g; ln1_b; bf; ln2_g; ln2_b]
            fixed((HIDDEN, HIDDEN)),                # MLM transform dense
            fixed((3, HIDDEN)),                     # [mlm_dense_b; mlm_ln_g; mlm_ln_b]
            fixed((HIDDEN, VOCAB)),                 # tied decoder (word_emb.T)
            fixed((1, VOCAB)),                      # decoder bias
        ],
        out_specs=fixed((M, VOCAB)),                # written once, on the last layer
        scratch_shapes=[pltpu.VMEM((M, HIDDEN), jnp.float32)],   # resident hidden state
        compiler_params=pltpu.CompilerParams(dimension_semantics=("arbitrary",)),
    )(emb, bias, prepped["emb_ln"],
      prepped["wqkv"], prepped["wo"], prepped["wi"], prepped["wf"],
      prepped["bqkv"], prepped["bi"], prepped["lvec"],
      prepped["mlm_dense_w"], prepped["mlm_vec"],
      prepped["decoder_w"], prepped["mlm_bias"])
    return logits.reshape(B, S, VOCAB)


# ----------------------------------- main -------------------------------------
if __name__ == "__main__":
    key = jax.random.PRNGKey(0)
    pkey, ikey = jax.random.split(key)
    params = init_params(pkey)
    prepped = prepare_inference_params(params)

    B, S = 2, 8
    input_ids = jax.random.randint(ikey, (B, S), 0, VOCAB, dtype=jnp.int32)
    attention_mask = jnp.ones((B, S), dtype=jnp.int32)

    forward = jax.jit(bert_lora_forward)
    logits = forward(prepped, input_ids, attention_mask)
    jax.block_until_ready(logits)
    assert logits.shape == (B, S, VOCAB) and logits.dtype == jnp.float32
    assert bool(jnp.all(jnp.isfinite(logits)))
    print("KERNEL_OK")
</pallas_src>

<mosaic_0001>
module attributes {stable_mosaic.version = 11 : i64} {
  func.func @_bert_forward_kernel(%arg0: i32, %arg1: memref<16x32xf32, #tpu.memory_space<vmem>>, %arg2: memref<2x1x8xf32, #tpu.memory_space<vmem>>, %arg3: memref<2x32xf32, #tpu.memory_space<vmem>>, %arg4: memref<1x32x96xbf16, #tpu.memory_space<vmem>>, %arg5: memref<1x32x32xbf16, #tpu.memory_space<vmem>>, %arg6: memref<1x32x64xbf16, #tpu.memory_space<vmem>>, %arg7: memref<1x64x32xbf16, #tpu.memory_space<vmem>>, %arg8: memref<1x1x96xf32, #tpu.memory_space<vmem>>, %arg9: memref<1x1x64xf32, #tpu.memory_space<vmem>>, %arg10: memref<1x6x32xf32, #tpu.memory_space<vmem>>, %arg11: memref<32x32xbf16, #tpu.memory_space<vmem>>, %arg12: memref<3x32xf32, #tpu.memory_space<vmem>>, %arg13: memref<32x128xbf16, #tpu.memory_space<vmem>>, %arg14: memref<1x128xf32, #tpu.memory_space<vmem>>, %arg15: memref<16x128xf32, #tpu.memory_space<vmem>>, %arg16: memref<16x32xf32, #tpu.memory_space<vmem>>) attributes {dimension_semantics = [#tpu.dimension_semantics<arbitrary>], iteration_bounds = array<i64: 2>, scalar_prefetch = 0 : i64, scratch_operands = 1 : i64, tpu.core_type = #tpu.core_type<tc>, window_params = [{pipeline_mode = #tpu.pipeline_mode<synchronous>, transform_indices = @transform_0, window_bounds = array<i64: 16, 32>}, {pipeline_mode = #tpu.pipeline_mode<synchronous>, transform_indices = @transform_1, window_bounds = array<i64: 2, 1, 8>}, {pipeline_mode = #tpu.pipeline_mode<synchronous>, transform_indices = @transform_2, window_bounds = array<i64: 2, 32>}, {transform_indices = @transform_3, window_bounds = array<i64: 1, 32, 96>}, {transform_indices = @transform_4, window_bounds = array<i64: 1, 32, 32>}, {transform_indices = @transform_5, window_bounds = array<i64: 1, 32, 64>}, {transform_indices = @transform_6, window_bounds = array<i64: 1, 64, 32>}, {transform_indices = @transform_7, window_bounds = array<i64: 1, 1, 96>}, {transform_indices = @transform_8, window_bounds = array<i64: 1, 1, 64>}, {transform_indices = @transform_9, window_bounds = array<i64: 1, 6, 32>}, {pipeline_mode = #tpu.pipeline_mode<synchronous>, transform_indices = @transform_10, window_bounds = array<i64: 32, 32>}, {pipeline_mode = #tpu.pipeline_mode<synchronous>, transform_indices = @transform_11, window_bounds = array<i64: 3, 32>}, {pipeline_mode = #tpu.pipeline_mode<synchronous>, transform_indices = @transform_12, window_bounds = array<i64: 32, 128>}, {pipeline_mode = #tpu.pipeline_mode<synchronous>, transform_indices = @transform_13, window_bounds = array<i64: 1, 128>}, {pipeline_mode = #tpu.pipeline_mode<synchronous>, transform_indices = @transform_14, window_bounds = array<i64: 16, 128>}]} {
    %c0_i32 = arith.constant 0 : i32
    %0 = arith.cmpi eq, %arg0, %c0_i32 : i32
    %1 = arith.extui %0 : i1 to i32
    %c0_i32_0 = arith.constant 0 : i32
    %2 = arith.cmpi ne, %1, %c0_i32_0 : i32
    scf.if %2 {
      %c0_72 = arith.constant 0 : index
      %c0_73 = arith.constant 0 : index
      %187 = vector.load %arg1[%c0_72, %c0_73] : memref<16x32xf32, #tpu.memory_space<vmem>>, vector<16x32xf32>
      %c0_74 = arith.constant 0 : index
      %c0_75 = arith.constant 0 : index
      %188 = vector.load %arg3[%c0_74, %c0_75] : memref<2x32xf32, #tpu.memory_space<vmem>>, vector<1x32xf32>
      %c1_76 = arith.constant 1 : index
      %c0_77 = arith.constant 0 : index
      %189 = vector.load %arg3[%c1_76, %c0_77] : memref<2x32xf32, #tpu.memory_space<vmem>>, vector<1x32xf32>
      %cst_78 = arith.constant dense<0.000000e+00> : vector<16xf32>
      %190 = vector.multi_reduction <add>, %187, %cst_78 [1] : vector<16x32xf32> to vector<16xf32>
      %191 = vector.shape_cast %190 : vector<16xf32> to vector<16x1xf32>
      %cst_79 = arith.constant 3.200000e+01 : f32
      %192 = vector.broadcast %cst_79 : f32 to vector<16x1xf32>
      %193 = arith.divf %191, %192 : vector<16x1xf32>
      %194 = vector.broadcast %193 : vector<16x1xf32> to vector<16x32xf32>
      %195 = arith.subf %187, %194 : vector<16x32xf32>
      %196 = arith.mulf %195, %195 : vector<16x32xf32>
      %cst_80 = arith.constant dense<0.000000e+00> : vector<16xf32>
      %197 = vector.multi_reduction <add>, %196, %cst_80 [1] : vector<16x32xf32> to vector<16xf32>
      %198 = vector.shape_cast %197 : vector<16xf32> to vector<16x1xf32>
      %cst_81 = arith.constant 3.200000e+01 : f32
      %199 = vector.broadcast %cst_81 : f32 to vector<16x1xf32>
      %200 = arith.divf %198, %199 : vector<16x1xf32>
      %cst_82 = arith.constant 9.99999996E-13 : f32
      %201 = vector.broadcast %cst_82 : f32 to vector<16x1xf32>
      %202 = arith.addf %200, %201 : vector<16x1xf32>
      %203 = math.rsqrt %202 : vector<16x1xf32>
      %204 = vector.broadcast %203 : vector<16x1xf32> to vector<16x32xf32>
      %205 = arith.mulf %195, %204 : vector<16x32xf32>
      %206 = vector.broadcast %188 : vector<1x32xf32> to vector<16x32xf32>
      %207 = arith.mulf %205, %206 : vector<16x32xf32>
      %208 = vector.broadcast %189 : vector<1x32xf32> to vector<16x32xf32>
      %209 = arith.addf %207, %208 : vector<16x32xf32>
      %c0_83 = arith.constant 0 : index
      %c0_84 = arith.constant 0 : index
      %210 = vector.load %arg16[%c0_83, %c0_84] : memref<16x32xf32, #tpu.memory_space<vmem>>, vector<16x32xf32>
      tpu.vector_store %arg16[%c0_83, %c0_84], %209 {strides = array<i32>} : memref<16x32xf32, #tpu.memory_space<vmem>>, vector<16x32xf32>,
    } else {
    }
    %c0 = arith.constant 0 : index
    %c0_1 = arith.constant 0 : index
    %3 = vector.load %arg16[%c0, %c0_1] : memref<16x32xf32, #tpu.memory_space<vmem>>, vector<16x32xf32>
    %4 = arith.truncf %3 : vector<16x32xf32> to vector<16x32xbf16>
    %c0_2 = arith.constant 0 : index
    %c0_3 = arith.constant 0 : index
    %c0_4 = arith.constant 0 : index
    %5 = vector.load %arg4[%c0_2, %c0_3, %c0_4] : memref<1x32x96xbf16, #tpu.memory_space<vmem>>, vector<1x32x96xbf16>
    %6 = vector.shape_cast %5 : vector<1x32x96xbf16> to vector<32x96xbf16>
    %cst = arith.constant dense<0.000000e+00> : vector<16x96xf32>
    %7 = tpu.matmul %4, %6, %cst {dimension_numbers = #tpu.dot_dimension_numbers<[1], [0], [0], [1], [0, 0, 1, 1], [], []>} : vector<16x32xbf16>, vector<32x96xbf16>, vector<16x96xf32> -> vector<16x96xf32>
    %c0_5 = arith.constant 0 : index
    %c0_6 = arith.constant 0 : index
    %c0_7 = arith.constant 0 : index
    %8 = vector.load %arg8[%c0_5, %c0_6, %c0_7] : memref<1x1x96xf32, #tpu.memory_space<vmem>>, vector<1x1x96xf32>
    %9 = vector.shape_cast %8 : vector<1x1x96xf32> to vector<1x96xf32>
    %10 = vector.broadcast %9 : vector<1x96xf32> to vector<16x96xf32>
    %11 = arith.addf %7, %10 : vector<16x96xf32>
    %12 = vector.shape_cast %11 : vector<16x96xf32> to vector<2x8x96xf32>
    %c0_8 = arith.constant 0 : index
    %c0_9 = arith.constant 0 : index
    %c0_10 = arith.constant 0 : index
    %13 = vector.load %arg2[%c0_8, %c0_9, %c0_10] : memref<2x1x8xf32, #tpu.memory_space<vmem>>, vector<2x1x8xf32>
    %14 = vector.extract_strided_slice %12 {offsets = [0, 0, 0], sizes = [2, 8, 8], strides = [1, 1, 1]} : vector<2x8x96xf32> to vector<2x8x8xf32>
    %15 = arith.truncf %14 : vector<2x8x8xf32> to vector<2x8x8xbf16>
    %16 = vector.extract_strided_slice %12 {offsets = [0, 0, 32], sizes = [2, 8, 8], strides = [1, 1, 1]} : vector<2x8x96xf32> to vector<2x8x8xf32>
    %17 = arith.truncf %16 : vector<2x8x8xf32> to vector<2x8x8xbf16>
    %18 = vector.extract_strided_slice %12 {offsets = [0, 0, 64], sizes = [2, 8, 8], strides = [1, 1, 1]} : vector<2x8x96xf32> to vector<2x8x8xf32>
    %19 = arith.truncf %18 : vector<2x8x8xf32> to vector<2x8x8xbf16>
    "tpu.trace_start"() <{level = 10 : i32, message = "bqd,bkd->bqk"}> : () -> ()
    %cst_11 = arith.constant dense<0.000000e+00> : vector<2x8x8xf32>
    %20 = tpu.matmul %15, %17, %cst_11 {dimension_numbers = #tpu.dot_dimension_numbers<[2], [2], [1], [1], [0, 0, 0, 1, 1, 1], [0], [0]>} : vector<2x8x8xbf16>, vector<2x8x8xbf16>, vector<2x8x8xf32> -> vector<2x8x8xf32>
    "tpu.trace_stop"() : () -> ()
    %21 = vector.broadcast %13 : vector<2x1x8xf32> to vector<2x8x8xf32>
    %22 = arith.addf %20, %21 : vector<2x8x8xf32>
    %cst_12 = arith.constant dense<0xFF800000> : vector<2x8xf32>
    %23 = vector.multi_reduction <maximumf>, %22, %cst_12 [2] : vector<2x8x8xf32> to vector<2x8xf32>
    %24 = vector.shape_cast %23 : vector<2x8xf32> to vector<2x8x1xf32>
    %25 = vector.broadcast %24 : vector<2x8x1xf32> to vector<2x8x8xf32>
    %26 = arith.subf %22, %25 : vector<2x8x8xf32>
    %27 = math.exp %26 : vector<2x8x8xf32>
    %cst_13 = arith.constant dense<0.000000e+00> : vector<2x8xf32>
    %28 = vector.multi_reduction <add>, %27, %cst_13 [2] : vector<2x8x8xf32> to vector<2x8xf32>
    %29 = vector.shape_cast %28 : vector<2x8xf32> to vector<2x8x1xf32>
    %30 = vector.broadcast %29 : vector<2x8x1xf32> to vector<2x8x8xf32>
    %31 = arith.divf %27, %30 : vector<2x8x8xf32>
    %32 = arith.truncf %31 : vector<2x8x8xf32> to vector<2x8x8xbf16>
    "tpu.trace_start"() <{level = 10 : i32, message = "bqk,bkd->bqd"}> : () -> ()
    %cst_14 = arith.constant dense<0.000000e+00> : vector<2x8x8xf32>
    %33 = tpu.matmul %32, %19, %cst_14 {dimension_numbers = #tpu.dot_dimension_numbers<[2], [1], [1], [2], [0, 0, 0, 1, 1, 2], [0], [0]>} : vector<2x8x8xbf16>, vector<2x8x8xbf16>, vector<2x8x8xf32> -> vector<2x8x8xf32>
    "tpu.trace_stop"() : () -> ()
    %34 = vector.extract_strided_slice %12 {offsets = [0, 0, 8], sizes = [2, 8, 8], strides = [1, 1, 1]} : vector<2x8x96xf32> to vector<2x8x8xf32>
    %35 = arith.truncf %34 : vector<2x8x8xf32> to vector<2x8x8xbf16>
    %36 = vector.extract_strided_slice %12 {offsets = [0, 0, 40], sizes = [2, 8, 8], strides = [1, 1, 1]} : vector<2x8x96xf32> to vector<2x8x8xf32>
    %37 = arith.truncf %36 : vector<2x8x8xf32> to vector<2x8x8xbf16>
    %38 = vector.extract_strided_slice %12 {offsets = [0, 0, 72], sizes = [2, 8, 8], strides = [1, 1, 1]} : vector<2x8x96xf32> to vector<2x8x8xf32>
    %39 = arith.truncf %38 : vector<2x8x8xf32> to vector<2x8x8xbf16>
    "tpu.trace_start"() <{level = 10 : i32, message = "bqd,bkd->bqk"}> : () -> ()
    %cst_15 = arith.constant dense<0.000000e+00> : vector<2x8x8xf32>
    %40 = tpu.matmul %35, %37, %cst_15 {dimension_numbers = #tpu.dot_dimension_numbers<[2], [2], [1], [1], [0, 0, 0, 1, 1, 1], [0], [0]>} : vector<2x8x8xbf16>, vector<2x8x8xbf16>, vector<2x8x8xf32> -> vector<2x8x8xf32>
    "tpu.trace_stop"() : () -> ()
    %41 = vector.broadcast %13 : vector<2x1x8xf32> to vector<2x8x8xf32>
    %42 = arith.addf %40, %41 : vector<2x8x8xf32>
    %cst_16 = arith.constant dense<0xFF800000> : vector<2x8xf32>
    %43 = vector.multi_reduction <maximumf>, %42, %cst_16 [2] : vector<2x8x8xf32> to vector<2x8xf32>
    %44 = vector.shape_cast %43 : vector<2x8xf32> to vector<2x8x1xf32>
    %45 = vector.broadcast %44 : vector<2x8x1xf32> to vector<2x8x8xf32>
    %46 = arith.subf %42, %45 : vector<2x8x8xf32>
    %47 = math.exp %46 : vector<2x8x8xf32>
    %cst_17 = arith.constant dense<0.000000e+00> : vector<2x8xf32>
    %48 = vector.multi_reduction <add>, %47, %cst_17 [2] : vector<2x8x8xf32> to vector<2x8xf32>
    %49 = vector.shape_cast %48 : vector<2x8xf32> to vector<2x8x1xf32>
    %50 = vector.broadcast %49 : vector<2x8x1xf32> to vector<2x8x8xf32>
    %51 = arith.divf %47, %50 : vector<2x8x8xf32>
    %52 = arith.truncf %51 : vector<2x8x8xf32> to vector<2x8x8xbf16>
    "tpu.trace_start"() <{level = 10 : i32, message = "bqk,bkd->bqd"}> : () -> ()
    %cst_18 = arith.constant dense<0.000000e+00> : vector<2x8x8xf32>
    %53 = tpu.matmul %52, %39, %cst_18 {dimension_numbers = #tpu.dot_dimension_numbers<[2], [1], [1], [2], [0, 0, 0, 1, 1, 2], [0], [0]>} : vector<2x8x8xbf16>, vector<2x8x8xbf16>, vector<2x8x8xf32> -> vector<2x8x8xf32>
    "tpu.trace_stop"() : () -> ()
    %54 = vector.extract_strided_slice %12 {offsets = [0, 0, 16], sizes = [2, 8, 8], strides = [1, 1, 1]} : vector<2x8x96xf32> to vector<2x8x8xf32>
    %55 = arith.truncf %54 : vector<2x8x8xf32> to vector<2x8x8xbf16>
    %56 = vector.extract_strided_slice %12 {offsets = [0, 0, 48], sizes = [2, 8, 8], strides = [1, 1, 1]} : vector<2x8x96xf32> to vector<2x8x8xf32>
    %57 = arith.truncf %56 : vector<2x8x8xf32> to vector<2x8x8xbf16>
    %58 = vector.extract_strided_slice %12 {offsets = [0, 0, 80], sizes = [2, 8, 8], strides = [1, 1, 1]} : vector<2x8x96xf32> to vector<2x8x8xf32>
    %59 = arith.truncf %58 : vector<2x8x8xf32> to vector<2x8x8xbf16>
    "tpu.trace_start"() <{level = 10 : i32, message = "bqd,bkd->bqk"}> : () -> ()
    %cst_19 = arith.constant dense<0.000000e+00> : vector<2x8x8xf32>
    %60 = tpu.matmul %55, %57, %cst_19 {dimension_numbers = #tpu.dot_dimension_numbers<[2], [2], [1], [1], [0, 0, 0, 1, 1, 1], [0], [0]>} : vector<2x8x8xbf16>, vector<2x8x8xbf16>, vector<2x8x8xf32> -> vector<2x8x8xf32>
    "tpu.trace_stop"() : () -> ()
    %61 = vector.broadcast %13 : vector<2x1x8xf32> to vector<2x8x8xf32>
    %62 = arith.addf %60, %61 : vector<2x8x8xf32>
    %cst_20 = arith.constant dense<0xFF800000> : vector<2x8xf32>
    %63 = vector.multi_reduction <maximumf>, %62, %cst_20 [2] : vector<2x8x8xf32> to vector<2x8xf32>
    %64 = vector.shape_cast %63 : vector<2x8xf32> to vector<2x8x1xf32>
    %65 = vector.broadcast %64 : vector<2x8x1xf32> to vector<2x8x8xf32>
    %66 = arith.subf %62, %65 : vector<2x8x8xf32>
    %67 = math.exp %66 : vector<2x8x8xf32>
    %cst_21 = arith.constant dense<0.000000e+00> : vector<2x8xf32>
    %68 = vector.multi_reduction <add>, %67, %cst_21 [2] : vector<2x8x8xf32> to vector<2x8xf32>
    %69 = vector.shape_cast %68 : vector<2x8xf32> to vector<2x8x1xf32>
    %70 = vector.broadcast %69 : vector<2x8x1xf32> to vector<2x8x8xf32>
    %71 = arith.divf %67, %70 : vector<2x8x8xf32>
    %72 = arith.truncf %71 : vector<2x8x8xf32> to vector<2x8x8xbf16>
    "tpu.trace_start"() <{level = 10 : i32, message = "bqk,bkd->bqd"}> : () -> ()
    %cst_22 = arith.constant dense<0.000000e+00> : vector<2x8x8xf32>
    %73 = tpu.matmul %72, %59, %cst_22 {dimension_numbers = #tpu.dot_dimension_numbers<[2], [1], [1], [2], [0, 0, 0, 1, 1, 2], [0], [0]>} : vector<2x8x8xbf16>, vector<2x8x8xbf16>, vector<2x8x8xf32> -> vector<2x8x8xf32>
    "tpu.trace_stop"() : () -> ()
    %74 = vector.extract_strided_slice %12 {offsets = [0, 0, 24], sizes = [2, 8, 8], strides = [1, 1, 1]} : vector<2x8x96xf32> to vector<2x8x8xf32>
    %75 = arith.truncf %74 : vector<2x8x8xf32> to vector<2x8x8xbf16>
    %76 = vector.extract_strided_slice %12 {offsets = [0, 0, 56], sizes = [2, 8, 8], strides = [1, 1, 1]} : vector<2x8x96xf32> to vector<2x8x8xf32>
    %77 = arith.truncf %76 : vector<2x8x8xf32> to vector<2x8x8xbf16>
    %78 = vector.extract_strided_slice %12 {offsets = [0, 0, 88], sizes = [2, 8, 8], strides = [1, 1, 1]} : vector<2x8x96xf32> to vector<2x8x8xf32>
    %79 = arith.truncf %78 : vector<2x8x8xf32> to vector<2x8x8xbf16>
    "tpu.trace_start"() <{level = 10 : i32, message = "bqd,bkd->bqk"}> : () -> ()
    %cst_23 = arith.constant dense<0.000000e+00> : vector<2x8x8xf32>
    %80 = tpu.matmul %75, %77, %cst_23 {dimension_numbers = #tpu.dot_dimension_numbers<[2], [2], [1], [1], [0, 0, 0, 1, 1, 1], [0], [0]>} : vector<2x8x8xbf16>, vector<2x8x8xbf16>, vector<2x8x8xf32> -> vector<2x8x8xf32>
    "tpu.trace_stop"() : () -> ()
    %81 = vector.broadcast %13 : vector<2x1x8xf32> to vector<2x8x8xf32>
    %82 = arith.addf %80, %81 : vector<2x8x8xf32>
    %cst_24 = arith.constant dense<0xFF800000> : vector<2x8xf32>
    %83 = vector.multi_reduction <maximumf>, %82, %cst_24 [2] : vector<2x8x8xf32> to vector<2x8xf32>
    %84 = vector.shape_cast %83 : vector<2x8xf32> to vector<2x8x1xf32>
    %85 = vector.broadcast %84 : vector<2x8x1xf32> to vector<2x8x8xf32>
    %86 = arith.subf %82, %85 : vector<2x8x8xf32>
    %87 = math.exp %86 : vector<2x8x8xf32>
    %cst_25 = arith.constant dense<0.000000e+00> : vector<2x8xf32>
    %88 = vector.multi_reduction <add>, %87, %cst_25 [2] : vector<2x8x8xf32> to vector<2x8xf32>
    %89 = vector.shape_cast %88 : vector<2x8xf32> to vector<2x8x1xf32>
    %90 = vector.broadcast %89 : vector<2x8x1xf32> to vector<2x8x8xf32>
    %91 = arith.divf %87, %90 : vector<2x8x8xf32>
    %92 = arith.truncf %91 : vector<2x8x8xf32> to vector<2x8x8xbf16>
    "tpu.trace_start"() <{level = 10 : i32, message = "bqk,bkd->bqd"}> : () -> ()
    %cst_26 = arith.constant dense<0.000000e+00> : vector<2x8x8xf32>
    %93 = tpu.matmul %92, %79, %cst_26 {dimension_numbers = #tpu.dot_dimension_numbers<[2], [1], [1], [2], [0, 0, 0, 1, 1, 2], [0], [0]>} : vector<2x8x8xbf16>, vector<2x8x8xbf16>, vector<2x8x8xf32> -> vector<2x8x8xf32>
    "tpu.trace_stop"() : () -> ()
    %94 = tpu.concatenate %33, %53, %73, %93 in 2 : vector<2x8x8xf32>, vector<2x8x8xf32>, vector<2x8x8xf32>, vector<2x8x8xf32> -> vector<2x8x32xf32>
    %95 = vector.shape_cast %94 : vector<2x8x32xf32> to vector<16x32xf32>
    %96 = arith.truncf %95 : vector<16x32xf32> to vector<16x32xbf16>
    %c0_27 = arith.constant 0 : index
    %c0_28 = arith.constant 0 : index
    %c0_29 = arith.constant 0 : index
    %97 = vector.load %arg5[%c0_27, %c0_28, %c0_29] : memref<1x32x32xbf16, #tpu.memory_space<vmem>>, vector<1x32x32xbf16>
    %98 = vector.shape_cast %97 : vector<1x32x32xbf16> to vector<32x32xbf16>
    %cst_30 = arith.constant dense<0.000000e+00> : vector<16x32xf32>
    %99 = tpu.matmul %96, %98, %cst_30 {dimension_numbers = #tpu.dot_dimension_numbers<[1], [0], [0], [1], [0, 0, 1, 1], [], []>} : vector<16x32xbf16>, vector<32x32xbf16>, vector<16x32xf32> -> vector<16x32xf32>
    %c0_31 = arith.constant 0 : index
    %c0_32 = arith.constant 0 : index
    %c0_33 = arith.constant 0 : index
    %100 = vector.load %arg10[%c0_31, %c0_32, %c0_33] : memref<1x6x32xf32, #tpu.memory_space<vmem>>, vector<1x1x32xf32>
    %101 = vector.shape_cast %100 : vector<1x1x32xf32> to vector<1x32xf32>
    %102 = vector.broadcast %101 : vector<1x32xf32> to vector<16x32xf32>
    %103 = arith.addf %99, %102 : vector<16x32xf32>
    %104 = arith.addf %103, %3 : vector<16x32xf32>
    %c0_34 = arith.constant 0 : index
    %c1 = arith.constant 1 : index
    %c0_35 = arith.constant 0 : index
    %105 = vector.load %arg10[%c0_34, %c1, %c0_35] : memref<1x6x32xf32, #tpu.memory_space<vmem>>, vector<1x1x32xf32>
    %106 = vector.shape_cast %105 : vector<1x1x32xf32> to vector<1x32xf32>
    %c0_36 = arith.constant 0 : index
    %c2 = arith.constant 2 : index
    %c0_37 = arith.constant 0 : index
    %107 = vector.load %arg10[%c0_36, %c2, %c0_37] : memref<1x6x32xf32, #tpu.memory_space<vmem>>, vector<1x1x32xf32>
    %108 = vector.shape_cast %107 : vector<1x1x32xf32> to vector<1x32xf32>
    %cst_38 = arith.constant dense<0.000000e+00> : vector<16xf32>
    %109 = vector.multi_reduction <add>, %104, %cst_38 [1] : vector<16x32xf32> to vector<16xf32>
    %110 = vector.shape_cast %109 : vector<16xf32> to vector<16x1xf32>
    %cst_39 = arith.constant 3.200000e+01 : f32
    %111 = vector.broadcast %cst_39 : f32 to vector<16x1xf32>
    %112 = arith.divf %110, %111 : vector<16x1xf32>
    %113 = vector.broadcast %112 : vector<16x1xf32> to vector<16x32xf32>
    %114 = arith.subf %104, %113 : vector<16x32xf32>
    %115 = arith.mulf %114, %114 : vector<16x32xf32>
    %cst_40 = arith.constant dense<0.000000e+00> : vector<16xf32>
    %116 = vector.multi_reduction <add>, %115, %cst_40 [1] : vector<16x32xf32> to vector<16xf32>
    %117 = vector.shape_cast %116 : vector<16xf32> to vector<16x1xf32>
    %cst_41 = arith.constant 3.200000e+01 : f32
    %118 = vector.broadcast %cst_41 : f32 to vector<16x1xf32>
    %119 = arith.divf %117, %118 : vector<16x1xf32>
    %cst_42 = arith.constant 9.99999996E-13 : f32
    %120 = vector.broadcast %cst_42 : f32 to vector<16x1xf32>
    %121 = arith.addf %119, %120 : vector<16x1xf32>
    %122 = math.rsqrt %121 : vector<16x1xf32>
    %123 = vector.broadcast %122 : vector<16x1xf32> to vector<16x32xf32>
    %124 = arith.mulf %114, %123 : vector<16x32xf32>
    %125 = vector.broadcast %106 : vector<1x32xf32> to vector<16x32xf32>
    %126 = arith.mulf %124, %125 : vector<16x32xf32>
    %127 = vector.broadcast %108 : vector<1x32xf32> to vector<16x32xf32>
    %128 = arith.addf %126, %127 : vector<16x32xf32>
    %129 = arith.truncf %128 : vector<16x32xf32> to vector<16x32xbf16>
    %c0_43 = arith.constant 0 : index
    %c0_44 = arith.constant 0 : index
    %c0_45 = arith.constant 0 : index
    %130 = vector.load %arg6[%c0_43, %c0_44, %c0_45] : memref<1x32x64xbf16, #tpu.memory_space<vmem>>, vector<1x32x64xbf16>
    %131 = vector.shape_cast %130 : vector<1x32x64xbf16> to vector<32x64xbf16>
    %cst_46 = arith.constant dense<0.000000e+00> : vector<16x64xf32>
    %132 = tpu.matmul %129, %131, %cst_46 {dimension_numbers = #tpu.dot_dimension_numbers<[1], [0], [0], [1], [0, 0, 1, 1], [], []>} : vector<16x32xbf16>, vector<32x64xbf16>, vector<16x64xf32> -> vector<16x64xf32>
    %c0_47 = arith.constant 0 : index
    %c0_48 = arith.constant 0 : index
    %c0_49 = arith.constant 0 : index
    %133 = vector.load %arg9[%c0_47, %c0_48, %c0_49] : memref<1x1x64xf32, #tpu.memory_space<vmem>>, vector<1x1x64xf32>
    %134 = vector.shape_cast %133 : vector<1x1x64xf32> to vector<1x64xf32>
    %135 = vector.broadcast %134 : vector<1x64xf32> to vector<16x64xf32>
    %136 = arith.addf %132, %135 : vector<16x64xf32>
    %cst_50 = arith.constant 5.000000e-01 : f32
    %137 = vector.broadcast %cst_50 : f32 to vector<16x64xf32>
    %138 = arith.mulf %137, %136 : vector<16x64xf32>
    %cst_51 = arith.constant 4.471500e-02 : f32
    %139 = vector.broadcast %cst_51 : f32 to vector<16x64xf32>
    %140 = arith.mulf %139, %136 : vector<16x64xf32>
    %141 = arith.mulf %140, %136 : vector<16x64xf32>
    %142 = arith.mulf %141, %136 : vector<16x64xf32>
    %143 = arith.addf %136, %142 : vector<16x64xf32>
    %cst_52 = arith.constant 0.797884583 : f32
    %144 = vector.broadcast %cst_52 : f32 to vector<16x64xf32>
    %145 = arith.mulf %144, %143 : vector<16x64xf32>
    %146 = math.tanh %145 : vector<16x64xf32>
    %cst_53 = arith.constant 1.000000e+00 : f32
    %147 = vector.broadcast %cst_53 : f32 to vector<16x64xf32>
    %148 = arith.addf %147, %146 : vector<16x64xf32>
    %149 = arith.mulf %138, %148 : vector<16x64xf32>
    %150 = arith.truncf %149 : vector<16x64xf32> to vector<16x64xbf16>
    %c0_54 = arith.constant 0 : index
    %c0_55 = arith.constant 0 : index
    %c0_56 = arith.constant 0 : index
    %151 = vector.load %arg7[%c0_54, %c0_55, %c0_56] : memref<1x64x32xbf16, #tpu.memory_space<vmem>>, vector<1x64x32xbf16>
    %152 = vector.shape_cast %151 : vector<1x64x32xbf16> to vector<64x32xbf16>
    %cst_57 = arith.constant dense<0.000000e+00> : vector<16x32xf32>
    %153 = tpu.matmul %150, %152, %cst_57 {dimension_numbers = #tpu.dot_dimension_numbers<[1], [0], [0], [1], [0, 0, 1, 1], [], []>} : vector<16x64xbf16>, vector<64x32xbf16>, vector<16x32xf32> -> vector<16x32xf32>
    %c0_58 = arith.constant 0 : index
    %c3 = arith.constant 3 : index
    %c0_59 = arith.constant 0 : index
    %154 = vector.load %arg10[%c0_58, %c3, %c0_59] : memref<1x6x32xf32, #tpu.memory_space<vmem>>, vector<1x1x32xf32>
    %155 = vector.shape_cast %154 : vector<1x1x32xf32> to vector<1x32xf32>
    %156 = vector.broadcast %155 : vector<1x32xf32> to vector<16x32xf32>
    %157 = arith.addf %153, %156 : vector<16x32xf32>
    %158 = arith.addf %157, %128 : vector<16x32xf32>
    %c0_60 = arith.constant 0 : index
    %c4 = arith.constant 4 : index
    %c0_61 = arith.constant 0 : index
    %159 = vector.load %arg10[%c0_60, %c4, %c0_61] : memref<1x6x32xf32, #tpu.memory_space<vmem>>, vector<1x1x32xf32>
    %160 = vector.shape_cast %159 : vector<1x1x32xf32> to vector<1x32xf32>
    %c0_62 = arith.constant 0 : index
    %c5 = arith.constant 5 : index
    %c0_63 = arith.constant 0 : index
    %161 = vector.load %arg10[%c0_62, %c5, %c0_63] : memref<1x6x32xf32, #tpu.memory_space<vmem>>, vector<1x1x32xf32>
    %162 = vector.shape_cast %161 : vector<1x1x32xf32> to vector<1x32xf32>
    %cst_64 = arith.constant dense<0.000000e+00> : vector<16xf32>
    %163 = vector.multi_reduction <add>, %158, %cst_64 [1] : vector<16x32xf32> to vector<16xf32>
    %164 = vector.shape_cast %163 : vector<16xf32> to vector<16x1xf32>
    %cst_65 = arith.constant 3.200000e+01 : f32
    %165 = vector.broadcast %cst_65 : f32 to vector<16x1xf32>
    %166 = arith.divf %164, %165 : vector<16x1xf32>
    %167 = vector.broadcast %166 : vector<16x1xf32> to vector<16x32xf32>
    %168 = arith.subf %158, %167 : vector<16x32xf32>
    %169 = arith.mulf %168, %168 : vector<16x32xf32>
    %cst_66 = arith.constant dense<0.000000e+00> : vector<16xf32>
    %170 = vector.multi_reduction <add>, %169, %cst_66 [1] : vector<16x32xf32> to vector<16xf32>
    %171 = vector.shape_cast %170 : vector<16xf32> to vector<16x1xf32>
    %cst_67 = arith.constant 3.200000e+01 : f32
    %172 = vector.broadcast %cst_67 : f32 to vector<16x1xf32>
    %173 = arith.divf %171, %172 : vector<16x1xf32>
    %cst_68 = arith.constant 9.99999996E-13 : f32
    %174 = vector.broadcast %cst_68 : f32 to vector<16x1xf32>
    %175 = arith.addf %173, %174 : vector<16x1xf32>
    %176 = math.rsqrt %175 : vector<16x1xf32>
    %177 = vector.broadcast %176 : vector<16x1xf32> to vector<16x32xf32>
    %178 = arith.mulf %168, %177 : vector<16x32xf32>
    %179 = vector.broadcast %160 : vector<1x32xf32> to vector<16x32xf32>
    %180 = arith.mulf %178, %179 : vector<16x32xf32>
    %181 = vector.broadcast %162 : vector<1x32xf32> to vector<16x32xf32>
    %182 = arith.addf %180, %181 : vector<16x32xf32>
    %c0_69 = arith.constant 0 : index
    %c0_70 = arith.constant 0 : index
    %183 = vector.load %arg16[%c0_69, %c0_70] : memref<16x32xf32, #tpu.memory_space<vmem>>, vector<16x32xf32>
    tpu.vector_store %arg16[%c0_69, %c0_70], %182 {strides = array<i32>} : memref<16x32xf32, #tpu.memory_space<vmem>>, vector<16x32xf32>,
    %c1_i32 = arith.constant 1 : i32
    %184 = arith.cmpi eq, %arg0, %c1_i32 : i32
    %185 = arith.extui %184 : i1 to i32
    %c0_i32_71 = arith.constant 0 : i32
    %186 = arith.cmpi ne, %185, %c0_i32_71 : i32
    scf.if %186 {
      %187 = arith.truncf %182 : vector<16x32xf32> to vector<16x32xbf16>
      %c0_72 = arith.constant 0 : index
      %c0_73 = arith.constant 0 : index
      %188 = vector.load %arg11[%c0_72, %c0_73] : memref<32x32xbf16, #tpu.memory_space<vmem>>, vector<32x32xbf16>
      %cst_74 = arith.constant dense<0.000000e+00> : vector<16x32xf32>
      %189 = tpu.matmul %187, %188, %cst_74 {dimension_numbers = #tpu.dot_dimension_numbers<[1], [0], [0], [1], [0, 0, 1, 1], [], []>} : vector<16x32xbf16>, vector<32x32xbf16>, vector<16x32xf32> -> vector<16x32xf32>
      %c0_75 = arith.constant 0 : index
      %c0_76 = arith.constant 0 : index
      %190 = vector.load %arg12[%c0_75, %c0_76] : memref<3x32xf32, #tpu.memory_space<vmem>>, vector<1x32xf32>
      %191 = vector.broadcast %190 : vector<1x32xf32> to vector<16x32xf32>
      %192 = arith.addf %189, %191 : vector<16x32xf32>
      %cst_77 = arith.constant 5.000000e-01 : f32
      %193 = vector.broadcast %cst_77 : f32 to vector<16x32xf32>
      %194 = arith.mulf %193, %192 : vector<16x32xf32>
      %cst_78 = arith.constant 4.471500e-02 : f32
      %195 = vector.broadcast %cst_78 : f32 to vector<16x32xf32>
      %196 = arith.mulf %195, %192 : vector<16x32xf32>
      %197 = arith.mulf %196, %192 : vector<16x32xf32>
      %198 = arith.mulf %197, %192 : vector<16x32xf32>
      %199 = arith.addf %192, %198 : vector<16x32xf32>
      %cst_79 = arith.constant 0.797884583 : f32
      %200 = vector.broadcast %cst_79 : f32 to vector<16x32xf32>
      %201 = arith.mulf %200, %199 : vector<16x32xf32>
      %202 = math.tanh %201 : vector<16x32xf32>
      %cst_80 = arith.constant 1.000000e+00 : f32
      %203 = vector.broadcast %cst_80 : f32 to vector<16x32xf32>
      %204 = arith.addf %203, %202 : vector<16x32xf32>
      %205 = arith.mulf %194, %204 : vector<16x32xf32>
      %c1_81 = arith.constant 1 : index
      %c0_82 = arith.constant 0 : index
      %206 = vector.load %arg12[%c1_81, %c0_82] : memref<3x32xf32, #tpu.memory_space<vmem>>, vector<1x32xf32>
      %c2_83 = arith.constant 2 : index
      %c0_84 = arith.constant 0 : index
      %207 = vector.load %arg12[%c2_83, %c0_84] : memref<3x32xf32, #tpu.memory_space<vmem>>, vector<1x32xf32>
      %cst_85 = arith.constant dense<0.000000e+00> : vector<16xf32>
      %208 = vector.multi_reduction <add>, %205, %cst_85 [1] : vector<16x32xf32> to vector<16xf32>
      %209 = vector.shape_cast %208 : vector<16xf32> to vector<16x1xf32>
      %cst_86 = arith.constant 3.200000e+01 : f32
      %210 = vector.broadcast %cst_86 : f32 to vector<16x1xf32>
      %211 = arith.divf %209, %210 : vector<16x1xf32>
      %212 = vector.broadcast %211 : vector<16x1xf32> to vector<16x32xf32>
      %213 = arith.subf %205, %212 : vector<16x32xf32>
      %214 = arith.mulf %213, %213 : vector<16x32xf32>
      %cst_87 = arith.constant dense<0.000000e+00> : vector<16xf32>
      %215 = vector.multi_reduction <add>, %214, %cst_87 [1] : vector<16x32xf32> to vector<16xf32>
      %216 = vector.shape_cast %215 : vector<16xf32> to vector<16x1xf32>
      %cst_88 = arith.constant 3.200000e+01 : f32
      %217 = vector.broadcast %cst_88 : f32 to vector<16x1xf32>
      %218 = arith.divf %216, %217 : vector<16x1xf32>
      %cst_89 = arith.constant 9.99999996E-13 : f32
      %219 = vector.broadcast %cst_89 : f32 to vector<16x1xf32>
      %220 = arith.addf %218, %219 : vector<16x1xf32>
      %221 = math.rsqrt %220 : vector<16x1xf32>
      %222 = vector.broadcast %221 : vector<16x1xf32> to vector<16x32xf32>
      %223 = arith.mulf %213, %222 : vector<16x32xf32>
      %224 = vector.broadcast %206 : vector<1x32xf32> to vector<16x32xf32>
      %225 = arith.mulf %223, %224 : vector<16x32xf32>
      %226 = vector.broadcast %207 : vector<1x32xf32> to vector<16x32xf32>
      %227 = arith.addf %225, %226 : vector<16x32xf32>
      %228 = arith.truncf %227 : vector<16x32xf32> to vector<16x32xbf16>
      %c0_90 = arith.constant 0 : index
      %c0_91 = arith.constant 0 : index
      %229 = vector.load %arg13[%c0_90, %c0_91] : memref<32x128xbf16, #tpu.memory_space<vmem>>, vector<32x128xbf16>
      %cst_92 = arith.constant dense<0.000000e+00> : vector<16x128xf32>
      %230 = tpu.matmul %228, %229, %cst_92 {dimension_numbers = #tpu.dot_dimension_numbers<[1], [0], [0], [1], [0, 0, 1, 1], [], []>} : vector<16x32xbf16>, vector<32x128xbf16>, vector<16x128xf32> -> vector<16x128xf32>
      %c0_93 = arith.constant 0 : index
      %c0_94 = arith.constant 0 : index
      %231 = vector.load %arg14[%c0_93, %c0_94] : memref<1x128xf32, #tpu.memory_space<vmem>>, vector<1x128xf32>
      %232 = vector.broadcast %231 : vector<1x128xf32> to vector<16x128xf32>
      %233 = arith.addf %230, %232 : vector<16x128xf32>
      %c0_95 = arith.constant 0 : index
      %c0_96 = arith.constant 0 : index
      %234 = vector.load %arg15[%c0_95, %c0_96] : memref<16x128xf32, #tpu.memory_space<vmem>>, vector<16x128xf32>
      tpu.vector_store %arg15[%c0_95, %c0_96], %233 {strides = array<i32>} : memref<16x128xf32, #tpu.memory_space<vmem>>, vector<16x128xf32>,
    } else {
    }
    return
  }
  func.func @transform_0(%arg0: i32) -> (i32, i32) {
    %c0_i32 = arith.constant 0 : i32
    %c0_i32_0 = arith.constant 0 : i32
    %c0_i32_1 = arith.constant 0 : i32
    return %c0_i32, %c0_i32_0 : i32, i32
  }
  func.func @transform_1(%arg0: i32) -> (i32, i32, i32) {
    %c0_i32 = arith.constant 0 : i32
    %c0_i32_0 = arith.constant 0 : i32
    %c0_i32_1 = arith.constant 0 : i32
    %c0_i32_2 = arith.constant 0 : i32
    return %c0_i32, %c0_i32_0, %c0_i32_1 : i32, i32, i32
  }
  func.func @transform_2(%arg0: i32) -> (i32, i32) {
    %c0_i32 = arith.constant 0 : i32
    %c0_i32_0 = arith.constant 0 : i32
    %c0_i32_1 = arith.constant 0 : i32
    return %c0_i32, %c0_i32_0 : i32, i32
  }
  func.func @transform_3(%arg0: i32) -> (i32, i32, i32) {
    %c0_i32 = arith.constant 0 : i32
    %c0_i32_0 = arith.constant 0 : i32
    %c0_i32_1 = arith.constant 0 : i32
    return %arg0, %c0_i32, %c0_i32_0 : i32, i32, i32
  }
  func.func @transform_4(%arg0: i32) -> (i32, i32, i32) {
    %c0_i32 = arith.constant 0 : i32
    %c0_i32_0 = arith.constant 0 : i32
    %c0_i32_1 = arith.constant 0 : i32
    return %arg0, %c0_i32, %c0_i32_0 : i32, i32, i32
  }
  func.func @transform_5(%arg0: i32) -> (i32, i32, i32) {
    %c0_i32 = arith.constant 0 : i32
    %c0_i32_0 = arith.constant 0 : i32
    %c0_i32_1 = arith.constant 0 : i32
    return %arg0, %c0_i32, %c0_i32_0 : i32, i32, i32
  }
  func.func @transform_6(%arg0: i32) -> (i32, i32, i32) {
    %c0_i32 = arith.constant 0 : i32
    %c0_i32_0 = arith.constant 0 : i32
    %c0_i32_1 = arith.constant 0 : i32
    return %arg0, %c0_i32, %c0_i32_0 : i32, i32, i32
  }
  func.func @transform_7(%arg0: i32) -> (i32, i32, i32) {
    %c0_i32 = arith.constant 0 : i32
    %c0_i32_0 = arith.constant 0 : i32
    %c0_i32_1 = arith.constant 0 : i32
    return %arg0, %c0_i32, %c0_i32_0 : i32, i32, i32
  }
  func.func @transform_8(%arg0: i32) -> (i32, i32, i32) {
    %c0_i32 = arith.constant 0 : i32
    %c0_i32_0 = arith.constant 0 : i32
    %c0_i32_1 = arith.constant 0 : i32
    return %arg0, %c0_i32, %c0_i32_0 : i32, i32, i32
  }
  func.func @transform_9(%arg0: i32) -> (i32, i32, i32) {
    %c0_i32 = arith.constant 0 : i32
    %c0_i32_0 = arith.constant 0 : i32
    %c0_i32_1 = arith.constant 0 : i32
    return %arg0, %c0_i32, %c0_i32_0 : i32, i32, i32
  }
  func.func @transform_10(%arg0: i32) -> (i32, i32) {
    %c0_i32 = arith.constant 0 : i32
    %c0_i32_0 = arith.constant 0 : i32
    %c0_i32_1 = arith.constant 0 : i32
    return %c0_i32, %c0_i32_0 : i32, i32
  }
  func.func @transform_11(%arg0: i32) -> (i32, i32) {
    %c0_i32 = arith.constant 0 : i32
    %c0_i32_0 = arith.constant 0 : i32
    %c0_i32_1 = arith.constant 0 : i32
    return %c0_i32, %c0_i32_0 : i32, i32
  }
  func.func @transform_12(%arg0: i32) -> (i32, i32) {
    %c0_i32 = arith.constant 0 : i32
    %c0_i32_0 = arith.constant 0 : i32
    %c0_i32_1 = arith.constant 0 : i32
    return %c0_i32, %c0_i32_0 : i32, i32
  }
  func.func @transform_13(%arg0: i32) -> (i32, i32) {
    %c0_i32 = arith.constant 0 : i32
    %c0_i32_0 = arith.constant 0 : i32
    %c0_i32_1 = arith.constant 0 : i32
    return %c0_i32, %c0_i32_0 : i32, i32
  }
  func.func @transform_14(%arg0: i32) -> (i32, i32) {
    %c0_i32 = arith.constant 0 : i32
    %c0_i32_0 = arith.constant 0 : i32
    %c0_i32_1 = arith.constant 0 : i32
    return %c0_i32, %c0_i32_0 : i32, i32
  }
}

</mosaic_0001>

<bundles_post_ra>
// kernel: bert_lora_forward.1
= control target key start
LH: loop header
LB: loop body
LE: loop exit
PB: predicated region body
PF: predicated region fallthrough
CT: control target
= control target key end

     0   :  { %s2467_s0 = inlined_call_operand.vmem [shape: f32[16,32], index: 0, kind: input, shape index: {}]   ;;  %s2468_s1 = inlined_call_operand.vmem [shape: f32[2,1,8], index: 1, kind: input, shape index: {}]   ;;  %s2469_s2 = inlined_call_operand.vmem [shape: f32[2,32], index: 2, kind: input, shape index: {}]   ;;  %s2470_s3 = inlined_call_operand.vmem [shape: bf16[2,32,96], index: 3, kind: input, shape index: {}]   ;;  %s2471_s4 = inlined_call_operand.vmem [shape: bf16[2,32,32], index: 4, kind: input, shape index: {}]   ;;  %s2472_s5 = inlined_call_operand.vmem [shape: bf16[2,32,64], index: 5, kind: input, shape index: {}]   ;;  %s2473_s6 = inlined_call_operand.vmem [shape: bf16[2,64,32], index: 6, kind: input, shape index: {}]   ;;  %s2474_s7 = inlined_call_operand.vmem [shape: f32[2,1,96], index: 7, kind: input, shape index: {}]   ;;  %s2475_s8 = inlined_call_operand.vmem [shape: f32[2,1,64], index: 8, kind: input, shape index: {}]   ;;  %s2476_s9 = inlined_call_operand.vmem [shape: f32[2,6,32], index: 9, kind: input, shape index: {}]   ;;  %s2477_s10 = inlined_call_operand.vmem [shape: bf16[32,32], index: 10, kind: input, shape index: {}]   ;;  %s2478_s11 = inlined_call_operand.vmem [shape: f32[3,32], index: 11, kind: input, shape index: {}]   ;;  %s2479_s12 = inlined_call_operand.vmem [shape: bf16[32,128], index: 12, kind: input, shape index: {}]   ;;  %s2480_s13 = inlined_call_operand.vmem [shape: f32[1,128], index: 13, kind: input, shape index: {}]   ;;  %s2481_s14 = inlined_call_operand.hbm [shape: f32[16,128], index: 14, kind: output, shape index: {}]  }
   0x1   :  { %2484 = sst [smem:[#allocation7_spill]] %s2470_s3 }
   0x2   :  { %2485 = sst [smem:[#allocation8_spill]] %s2471_s4 }
   0x3   :  { %2486 = sst [smem:[#allocation9_spill]] %s2479_s12 }
   0x4   :  { %2487 = sst [smem:[#allocation10_spill]] %s2480_s13 }
   0x5   :  { %2488 = sst [smem:[#allocation11_spill]] %s2481_s14 }
   0x6   :  { %19 = vsyncpa [#allocation4], 0  ;;  %s2166_s29 = smov 0  }
   0x7 LB: > { %2489 = sst [smem:[#allocation6_spill]] %s2071_s29  ;;  %s2172_s30 = sadd.s32 4294967295, %s2071_s29   ;;  %s2071_s29 = sphi %s2166_s29, %s25_s29  }
   0x8   : > { %p1798_p0 = scmp.ge.s32.totalorder %s2071_s29, 1  ;;  %p463_p1 = scmp.lt.s32.totalorder %s2071_s29, 3 }
   0xa   : > { %p464_p2 = pnand %p1798_p0, %p463_p1 }
   0xb   : > { %p529_p3 = scmp.lt.s32.totalorder (!%p464_p2), %s2172_s30, 1  ;;  %s2490_s3 = sld [smem:[#allocation7_spill]] (!%p464_p2) }
   0xc   : > { %467 = sbr.rel (%p464_p2) target bundleno = 2904 (0xb58), region = 76  ;;  %s2491_s4 = sld [smem:[#allocation8_spill]] (!%p464_p2) }
   0xd   : > { %p1808_p4 = scmp.ne.s32.totalorder (!%p464_p2), %s2172_s30, 0 }
  0x11   : > { %s2178_s15 = scalar_select %p529_p3, %s2172_s30, 1 }
  0x13   : > { %s1892_s16 = sshll.u32 %s2178_s15, 4  ;;  %s1895_s17 = sshll.u32 %s2178_s15, 5 }
  0x14   : > { %s2185_s20 = scalar_lea.vmem %s2490_s3, %s1892_s16  ;;  %s2190_s23 = scalar_lea.vmem %s2491_s4, %s1892_s16 }
  0x15   : > { %s2195_s26 = scalar_lea.vmem %s2472_s5, %s1892_s16  ;;  %s2200_s29 = scalar_lea.vmem %s2473_s6, %s1895_s17 }
  0x16   : > { %s551_s18 = scalar_lea.vmem %s2474_s7, %s2178_s15  ;;  %s554_s21 = scalar_lea.vmem %s2475_s8, %s2178_s15 }
  0x17   : > { %s1807_s22 = sshll.u32 %s2178_s15, 3  ;;  %563 = sbr.rel (%p1808_p4) target bundleno = 306 (0x132), region = 80 }
  0x18   : > { %s2214_s24 = scalar_lea.vmem %s2476_s9, %s1807_s22 }
  0x1c   : > { %v564_v0 = vld [vmem:[%s2467_s0] sm:$0xff]  ;;  %vm568_vm0 = vcmask 261120   ;;  %v565_v2 = vld [vmem:[%s2467_s0 + $0x8] sm:$0xff]  ;;  %v2073_v4 = vmov 32.0  }
  0x1d   : > { %v569_v1 = vsel %vm568_vm0, %v564_v0, 0.0  ;;  %v572_v3 = vsel %vm568_vm0, %v565_v2, 0.0  ;;  %1944 = vrcp.f32 %v2073_v4  ;;  %v1942_v35 = vld [vmem:[%s2469_s2] ss:$0 sm:$0xff]  ;;  %v1943_v38 = vld [vmem:[%s2469_s2 + $0x1] ss:$0 sm:$0xff] }
  0x1e   : > { %570 = vadd.xlane.f32.xlu0 %v569_v1 }
  0x23   : > { %v1945_v5 = vpop.eup %1944 }
  0x24   : > { %v576_v6 = vmul.f32 32.0, %v1945_v5  ;;  %vm580_vm1 = vweird.f32 %v1945_v5 }
  0x26   : > { %573 = vadd.xlane.f32.xlu0 %v572_v3  ;;  %v577_v7 = vsub.f32 1.0, %v576_v6 }
  0x28   : > { %v578_v8 = vmul.f32 %v1945_v5, %v577_v7 }
  0x2a   : > { %v579_v9 = vadd.f32 %v1945_v5, %v578_v8 }
  0x2c   : > { %v581_v10 = vsel %vm580_vm1, %v1945_v5, %v579_v9 }
  0x91   : > { %v571_v11 = vpop.xlane.xlu0 %570 }
  0x92   : > { %v582_v12 = vmul.f32 %v581_v10, %v571_v11 }
  0x94   : > { %v584_v13 = vsub.f32 %v564_v0, %v582_v12 }
  0x96   : > { %v586_v14 = vmul.f32 %v584_v13, %v584_v13 }
  0x98   : > { %v588_v15 = vsel %vm568_vm0, %v586_v14, 0.0 }
  0x99   : > { %589 = vadd.xlane.f32.xlu1 %v588_v15  ;;  %v574_v16 = vpop.xlane.xlu0 %573 }
  0x9a   : > { %v583_v17 = vmul.f32 %v581_v10, %v574_v16 }
  0x9c   : > { %v585_v18 = vsub.f32 %v565_v2, %v583_v17 }
  0x9e   : > { %v587_v19 = vmul.f32 %v585_v18, %v585_v18 }
  0xa0   : > { %v591_v20 = vsel %vm568_vm0, %v587_v19, 0.0 }
  0xa1   : > { %592 = vadd.xlane.f32.xlu1 %v591_v20 }
 0x10c   : > { %v590_v21 = vpop.xlane.xlu1 %589 }
 0x10d   : > { %v594_v22 = vmul.f32 %v590_v21, %v581_v10 }
 0x10f   : > { %v596_v23 = vadd.f32 1e-12, %v594_v22 }
 0x111   : > { %1946 = vrsqrt.f32 %v596_v23  ;;  %vm604_vm3 = vweird.f32 %v596_v23 }
 0x114   : > { %v593_v24 = vpop.xlane.xlu1 %592 }
 0x115   : > { %v595_v25 = vmul.f32 %v593_v24, %v581_v10 }
 0x117   : > { %v1947_v26 = vpop.eup %1946  ;;  %v597_v27 = vadd.f32 1e-12, %v595_v25 }
 0x118   : > { %v599_v28 = vmul.f32 %v1947_v26, %v596_v23  ;;  %vm605_vm2 = vweird.f32 %v1947_v26 }
 0x119   : > { %1948 = vrsqrt.f32 %v597_v27  ;;  %vm606_vm4 = vmor %vm604_vm3, %vm605_vm2  ;;  %vm614_vm6 = vweird.f32 %v597_v27 }
 0x11a   : > { %v600_v29 = vmul.f32 %v1947_v26, %v599_v28 }
 0x11c   : > { %v601_v30 = vmul.f32 0.5, %v600_v29 }
 0x11e   : > { %v602_v31 = vsub.f32 1.5, %v601_v30 }
 0x11f   : > { %v1949_v32 = vpop.eup %1948 }
 0x120   : > { %v603_v33 = vmul.f32 %v1947_v26, %v602_v31  ;;  %v609_v34 = vmul.f32 %v1949_v32, %v597_v27  ;;  %vm615_vm5 = vweird.f32 %v1949_v32 }
 0x121   : > { %vm616_vm7 = vmor %vm614_vm6, %vm615_vm5 }
 0x122   : > { %v607_v36 = vsel %vm606_vm4, %v1947_v26, %v603_v33  ;;  %v610_v37 = vmul.f32 %v1949_v32, %v609_v34 }
 0x123   : > { %v618_v39 = vmul.f32 %v607_v36, %v584_v13 }
 0x124   : > { %v611_v40 = vmul.f32 0.5, %v610_v37 }
 0x125   : > { %v621_v41 = vmul.f32 %v1942_v35, %v618_v39 }
 0x126   : > { %v612_v42 = vsub.f32 1.5, %v611_v40 }
 0x127   : > { %v624_v43 = vadd.f32 %v1943_v38, %v621_v41 }
 0x128   : > { %v613_v44 = vmul.f32 %v1949_v32, %v612_v42 }
 0x129   : > { %626 = vst.msk [vmem:[#allocation2] sm:$0xff] %vm568_vm0, %v624_v43 }
 0x12a   : > { %v617_v45 = vsel %vm616_vm7, %v1949_v32, %v613_v44 }
 0x12b   : > { %v619_v46 = vmul.f32 %v617_v45, %v585_v18 }
 0x12d   : > { %v622_v47 = vmul.f32 %v1942_v35, %v619_v46 }
 0x12f   : > { %v625_v48 = vadd.f32 %v1943_v38, %v622_v47 }
 0x131   : > { %627 = vst.msk [vmem:[#allocation2 + $0x8] sm:$0xff] %vm568_vm0, %v625_v48 }
 0x132 PF: > { %v1897_v49 = vld [vmem:[%s2185_s20 + $0x8] sm:$0xff]  ;;  %v1896_v50 = vld [vmem:[%s2185_s20] sm:$0xff]  ;;  %vm651_vm8 = vcmask 261120   ;;  %s2074_s20 = smov 120   ;;  %s2075_s19 = smov 88   ;;  %vm684_vm9 = vcmask 64512  }
 0x133   : > { %v2237_v51 = vld [vmem:[#allocation2] sm:$0xff]  ;;  %661 = vmatpush.bf16.msra.mxu0 %v1897_v49  ;;  %s2076_s22 = smov 96   ;;  %s2078_s16 = smov 80   ;;  %vm783_vm10 = vcmask 1043456  }
 0x134   : > { %v1965_v54 = vld [vmem:[%s551_s18] ss:$0 sm:$0xff]  ;;  %s2077_s18 = smov 112   ;;  %s2079_s17 = smov 72   ;;  %v1967_v32 = vld [vmem:[%s2468_s1 + $0x1] ss:$0 sm:$0xff] }
 0x135   : > { %s2080_s13 = smov 104   ;;  %v1966_v23 = vld [vmem:[%s2468_s1] ss:$0 sm:$0xff]  ;;  %s2081_s25 = smov 56  }
 0x136   : > { %s2082_s27 = smov 64   ;;  %s2083_s28 = smov 40  }
 0x137   : > { %662 = vmatpush.bf16.msra.mxu0 %v1896_v50  ;;  %p1869_p5 = scmp.ne.s32.totalorder %s2172_s30, 1 }
 0x138   : > { %v2239_v52 = vld [vmem:[#allocation2 + $0x8] sm:$0xff]  ;;  %s2492_s4 = sld [smem:[#allocation9_spill]] (!%p1869_p5) }
 0x139   : > { %v630_v53 = vpack.c.bf16 %v2239_v52, %v2237_v51 }
 0x13b   : > { %1817 = vmatmul.msk.bf16.vlgmr.msra.gmra.mxu0 %vm651_vm8, %v630_v53 }
 0x1b8   : > { %v664_v55 = vpop.f32.mrf.mxu0 }
 0x1b9   : > { %v665_v56 = vadd.f32 %v1965_v54, %v664_v55 }
 0x1bb   : > { %v671_v57 = vpack.c.bf16 %v665_v56, %v665_v56 }
 0x1bd   : > { %v680_v58 = vunpack.c.l.b16 %v671_v57 }
 0x1bf   : > { %v2249_v59 = vpack.c.b16 %v680_v58, %v680_v58 }
 0x1c0   : > { %v666_v60 = vpop.f32.mrf.mxu0 }
 0x1c1   : > { %v667_v61 = vadd.f32 %v1965_v54, %v666_v60  ;;  %821 = vrot.lane.b32.xlu2 %v2249_v59, %s2074_s20  ;;  %823 = vrot.lane.b32.xlu1 %v2249_v59, %s2075_s19 }
 0x1c2   : > { %682 = vrot.lane.b32.xlu0 %v2249_v59, %s2076_s22 }
 0x1c3   : > { %v672_v62 = vpack.c.bf16 %v667_v61, %v667_v61 }
 0x1c5   : > { %v705_v63 = vunpack.c.l.b16 %v672_v62 }
 0x1c7   : > { %v2254_v0 = vpack.c.b16 %v705_v63, %v705_v63 }
 0x1c9   : > { %844 = vrot.lane.b32.xlu2 %v2254_v0, %s2074_s20  ;;  %846 = vrot.lane.b32.xlu1 %v2254_v0, %s2075_s19  ;;  %s2084_s20 = smov 48   ;;  %s2085_s19 = smov 8  }
 0x1ca   : > { %707 = vrot.lane.b32.xlu0 %v2254_v0, %s2076_s22  ;;  %s2086_s22 = smov 16  }
 0x1d1   : > { %959 = vrot.lane.b32.xlu2 %v2249_v59, %s2077_s18  ;;  %984 = vrot.lane.b32.xlu1 %v2254_v0, %s2078_s16 }
 0x1d2   : > { %961 = vrot.lane.b32.xlu0 %v2249_v59, %s2078_s16 }
 0x1d9   : > { %1122 = vrot.lane.b32.xlu2 %v2254_v0, %s2079_s17  ;;  %1099 = vrot.lane.b32.xlu1 %v2249_v59, %s2079_s17 }
 0x1da   : > { %982 = vrot.lane.b32.xlu0 %v2254_v0, %s2077_s18  ;;  %s2087_s18 = smov 24  }
 0x1e1   : > { %1120 = vrot.lane.b32.xlu1 %v2254_v0, %s2080_s13 }
 0x1e2   : > { %1097 = vrot.lane.b32.xlu0 %v2249_v59, %s2080_s13 }
 0x21b   : > { %v822_v1 = vpop.permute.xlu2 %821 }
 0x223   : > { %v845_v6 = vpop.permute.xlu2 %844 }
 0x22b   : > { %v960_v11 = vpop.permute.xlu2 %959 }
 0x233   : > { %v824_v2 = vpop.permute.xlu1 %823  ;;  %v1123_v16 = vpop.permute.xlu2 %1122 }
 0x234   : > { %v683_v3 = vpop.permute.xlu0 %682  ;;  %v829_v4 = vsel %vm684_vm9, %v824_v2, 0  ;;  %v1128_v19 = vsel %vm684_vm9, %v1123_v16, 0 }
 0x235   : > { %v689_v5 = vsel %vm684_vm9, %v683_v3, 0  ;;  %838 = vmatpush.bf16.xpose.msrb.mxu0 %v829_v4 }
 0x236   : > { %698 = vmatpush.bf16.xpose.msra.mxu1 %v689_v5 }
 0x23b   : > { %v847_v7 = vpop.permute.xlu1 %846 }
 0x23c   : > { %v708_v8 = vpop.permute.xlu0 %707  ;;  %1822 = vmatmul.msk.bf16.vlgmr.msrb.gmra.mxu0 %vm684_vm9, %v822_v1  ;;  %v852_v9 = vsel %vm684_vm9, %v847_v7, 0 }
 0x23d   : > { %1818 = vmatmul.msk.bf16.vlgmr.msra.gmra.mxu1 %vm684_vm9, %v671_v57  ;;  %v713_v10 = vsel %vm684_vm9, %v708_v8, 0 }
 0x23e   : > { %722 = vmatpush.bf16.xpose.msra.mxu2 %v713_v10  ;;  %861 = vmatpush.bf16.xpose.msrb.mxu1 %v852_v9 }
 0x243   : > { %v985_v12 = vpop.permute.xlu1 %984 }
 0x244   : > { %v990_v13 = vsel %vm684_vm9, %v985_v12, 0  ;;  %v962_v14 = vpop.permute.xlu0 %961 }
 0x245   : > { %v967_v15 = vsel %vm684_vm9, %v962_v14, 0  ;;  %1819 = vmatmul.msk.bf16.vlgmr.msra.gmra.mxu2 %vm684_vm9, %v672_v62 }
 0x246   : > { %999 = vmatpush.bf16.xpose.msra.mxu1 %v990_v13  ;;  %976 = vmatpush.bf16.xpose.msra.mxu0 %v967_v15 }
 0x24b   : > { %v1100_v17 = vpop.permute.xlu1 %1099 }
 0x24c   : > { %v1105_v18 = vsel %vm684_vm9, %v1100_v17, 0  ;;  %v983_v20 = vpop.permute.xlu0 %982 }
 0x24d   : > { %1823 = vmatmul.msk.bf16.vlgmr.msrb.gmra.mxu1 %vm684_vm9, %v845_v6  ;;  %1826 = vmatmul.msk.bf16.vlgmr.msra.gmra.mxu0 %vm684_vm9, %v960_v11 }
 0x24e   : > { %1137 = vmatpush.bf16.xpose.msrb.mxu1 %v1128_v19  ;;  %1114 = vmatpush.bf16.xpose.msrb.mxu0 %v1105_v18 }
 0x253   : > { %v1121_v22 = vpop.permute.xlu1 %1120 }
 0x254   : > { %v1098_v21 = vpop.permute.xlu0 %1097 }
 0x25d   : > { %1827 = vmatmul.msk.bf16.vlgmr.msra.gmra.mxu1 %vm684_vm9, %v983_v20  ;;  %1830 = vmatmul.msk.bf16.vlgmr.msrb.gmra.mxu0 %vm684_vm9, %v1098_v21 }
 0x26d   : > { %1831 = vmatmul.msk.bf16.vlgmr.msrb.gmra.mxu1 %vm684_vm9, %v1121_v22 }
 0x2b9   : > { %v840_v24 = vpop.f32.mrf.mxu0 }
 0x2ba   : > { %v700_v25 = vpop.f32.mrf.mxu1  ;;  %v841_v26 = vadd.f32 %v1966_v23, %v840_v24 }
 0x2bb   : > { %v701_v27 = vadd.f32 %v1966_v23, %v700_v25 }
 0x2bc   : > { %v867_v28 = vsel %vm684_vm9, %v841_v26, -inf }
 0x2bd   : > { %868 = vmax.xlane.f32.xlu1 %v867_v28  ;;  %v728_v29 = vsel %vm684_vm9, %v701_v27, -inf }
 0x2be   : > { %729 = vmax.xlane.f32.xlu2 %v728_v29 }
 0x2c1   : > { %v842_v30 = vpop.f32.mrf.mxu0 }
 0x2c2   : > { %v702_v31 = vpop.f32.mrf.mxu1 }
 0x2c8   : > { %v724_v33 = vpop.f32.mrf.mxu2 }
 0x2c9   : > { %v725_v34 = vadd.f32 %v1967_v32, %v724_v33 }
 0x2ca   : > { %v863_v35 = vpop.f32.mrf.mxu1  ;;  %v978_v36 = vpop.f32.mrf.mxu0 }
 0x2cb   : > { %v864_v37 = vadd.f32 %v1967_v32, %v863_v35  ;;  %v2291_v38 = vadd.f32 %v1966_v23, %v978_v36  ;;  %v731_v39 = vsel %vm684_vm9, %v725_v34, -inf }
 0x2cc   : > { %732 = vmax.xlane.f32.xlu0 %v731_v39 }
 0x2cd   : > { %v870_v40 = vsel %vm684_vm9, %v864_v37, -inf  ;;  %v1005_v56 = vsel %vm684_vm9, %v2291_v38, -inf }
 0x2ce   : > { %871 = vmax.xlane.f32.xlu2 %v870_v40 }
 0x2d0   : > { %v726_v41 = vpop.f32.mrf.mxu2 }
 0x2d2   : > { %v865_v42 = vpop.f32.mrf.mxu1  ;;  %v980_v43 = vpop.f32.mrf.mxu0 }
 0x2d6   : > { %938 = vrot.lane.b32.xlu1 %v2254_v0, %s2081_s25 }
 0x2da   : > { %v1001_v44 = vpop.f32.mrf.mxu1  ;;  %v1116_v45 = vpop.f32.mrf.mxu0 }
 0x2db   : > { %v2296_v46 = vadd.f32 %v1967_v32, %v1001_v44  ;;  %v1117_v57 = vadd.f32 %v1966_v23, %v1116_v45 }
 0x2dd   : > { %v1008_v47 = vsel %vm684_vm9, %v2296_v46, -inf  ;;  %v1143_v58 = vsel %vm684_vm9, %v1117_v57, -inf }
 0x2de   : > { %1009 = vmax.xlane.f32.xlu0 %v1008_v47 }
 0x2e2   : > { %v1003_v48 = vpop.f32.mrf.mxu1  ;;  %v1118_v49 = vpop.f32.mrf.mxu0 }
 0x2e6   : > { %778 = vrot.lane.b32.xlu2 %v2249_v59, %s2082_s27 }
 0x2ea   : > { %v1139_v50 = vpop.f32.mrf.mxu1 }
 0x2eb   : > { %v1140_v53 = vadd.f32 %v1967_v32, %v1139_v50 }
 0x2ed   : > { %v1146_v54 = vsel %vm684_vm9, %v1140_v53, -inf }
 0x2ee   : > { %1147 = vmax.xlane.f32.xlu0 %v1146_v54 }
 0x2f2   : > { %v1141_v55 = vpop.f32.mrf.mxu1 }
 0x302   : > { %800 = vrot.lane.b32.xlu0 %v2254_v0, %s2082_s27 }
 0x30f   : > { %1006 = vmax.xlane.f32.xlu2 %v1005_v56 }
 0x317   : > { %1144 = vmax.xlane.f32.xlu2 %v1143_v58 }
 0x32f   : > { %917 = vrot.lane.b32.xlu2 %v2249_v59, %s2081_s25 }
 0x330   : > { %v869_v60 = vpop.xlane.xlu1 %868 }
 0x331   : > { %v873_v61 = vsub.f32 %v841_v26, %v869_v60  ;;  %v730_v62 = vpop.xlane.xlu2 %729 }
 0x332   : > { %v734_v63 = vsub.f32 %v701_v27, %v730_v62 }
 0x333   : > { %v875_v1 = vmul.f32 1.442695, %v873_v61 }
 0x334   : > { %v736_v2 = vmul.f32 1.442695, %v734_v63 }
 0x335   : > { %1975 = vpow2.f32 %v875_v1 }
 0x336   : > { %1977 = vpow2.f32 %v736_v2 }
 0x33b   : > { %v2307_v3 = vpop.eup %1975 }
 0x33c   : > { %v2309_v4 = vpop.eup %1977  ;;  %v879_v5 = vsel %vm684_vm9, %v2307_v3, 0.0 }
 0x33d   : > { %v740_v6 = vsel %vm684_vm9, %v2309_v4, 0.0  ;;  %880 = vadd.xlane.f32.xlu0 %v879_v5 }
 0x33e   : > { %741 = vadd.xlane.f32.xlu1 %v740_v6 }
 0x33f   : > { %v733_v7 = vpop.xlane.xlu0 %732 }
 0x340   : > { %v735_v8 = vsub.f32 %v725_v34, %v733_v7 }
 0x341   : > { %v872_v9 = vpop.xlane.xlu2 %871 }
 0x342   : > { %v738_v10 = vmul.f32 1.442695, %v735_v8  ;;  %v874_v11 = vsub.f32 %v864_v37, %v872_v9 }
 0x344   : > { %1979 = vpow2.f32 %v738_v10  ;;  %v877_v12 = vmul.f32 1.442695, %v874_v11 }
 0x346   : > { %1981 = vpow2.f32 %v877_v12 }
 0x348   : > { %v939_v43 = vpop.permute.xlu1 %938 }
 0x349   : > { %v779_v13 = vpop.permute.xlu2 %778 }
 0x34a   : > { %v2315_v14 = vpop.eup %1979  ;;  %v785_v15 = vsel %vm783_vm10, %v779_v13, 0  ;;  %v944_v13 = vsel %vm783_vm10, %v939_v43, 0 }
 0x34b   : > { %794 = vmatpush.bf16.msra.mxu3 %v785_v15  ;;  %v743_v16 = vsel %vm684_vm9, %v2315_v14, 0.0 }
 0x34c   : > { %744 = vadd.xlane.f32.xlu1 %v743_v16  ;;  %v2320_v17 = vpop.eup %1981 }
 0x34d   : > { %v882_v18 = vsel %vm684_vm9, %v2320_v17, 0.0 }
 0x351   : > { %v1010_v19 = vpop.xlane.xlu0 %1009 }
 0x352   : > { %v1012_v29 = vsub.f32 %v2296_v46, %v1010_v19 }
 0x354   : > { %883 = vadd.xlane.f32.xlu1 %v882_v18  ;;  %v1015_v31 = vmul.f32 1.442695, %v1012_v29 }
 0x361   : > { %v1148_v20 = vpop.xlane.xlu0 %1147 }
 0x362   : > { %v1150_v21 = vsub.f32 %v1140_v53, %v1148_v20 }
 0x364   : > { %v1153_v22 = vmul.f32 1.442695, %v1150_v21 }
 0x366   : > { %1983 = vpow2.f32 %v1153_v22 }
 0x36c   : > { %v2324_v23 = vpop.eup %1983 }
 0x36d   : > { %v1158_v24 = vsel %vm684_vm9, %v2324_v23, 0.0 }
 0x36e   : > { %1159 = vadd.xlane.f32.xlu2 %v1158_v24 }
 0x374   : > { %v801_v25 = vpop.permute.xlu0 %800 }
 0x375   : > { %v806_v26 = vsel %vm783_vm10, %v801_v25, 0 }
 0x376   : > { %815 = vmatpush.bf16.msrb.mxu3 %v806_v26 }
 0x382   : > { %v1007_v27 = vpop.xlane.xlu2 %1006 }
 0x383   : > { %v1011_v28 = vsub.f32 %v2291_v38, %v1007_v27 }
 0x385   : > { %v1013_v30 = vmul.f32 1.442695, %v1011_v28 }
 0x387   : > { %1985 = vpow2.f32 %v1013_v30 }
 0x388   : > { %1987 = vpow2.f32 %v1015_v31 }
 0x38a   : > { %v1145_v32 = vpop.xlane.xlu2 %1144 }
 0x38b   : > { %v1149_v33 = vsub.f32 %v1117_v57, %v1145_v32 }
 0x38d   : > { %v2331_v34 = vpop.eup %1985  ;;  %v1151_v35 = vmul.f32 1.442695, %v1149_v33 }
 0x38e   : > { %v1017_v36 = vsel %vm684_vm9, %v2331_v34, 0.0  ;;  %v2335_v39 = vpop.eup %1987 }
 0x38f   : > { %1989 = vpow2.f32 %v1151_v35  ;;  %1018 = vadd.xlane.f32.xlu1 %v1017_v36  ;;  %v1020_v42 = vsel %vm684_vm9, %v2335_v39, 0.0 }
 0x392   : > { %v918_v37 = vpop.permute.xlu2 %917 }
 0x393   : > { %v923_v38 = vsel %vm783_vm10, %v918_v37, 0 }
 0x394   : > { %932 = vmatpush.bf16.msrb.mxu2 %v923_v38 }
 0x395   : > { %v2338_v40 = vpop.eup %1989 }
 0x396   : > { %v1155_v41 = vsel %vm684_vm9, %v2338_v40, 0.0 }
 0x397   : > { %1156 = vadd.xlane.f32.xlu0 %v1155_v41  ;;  %1021 = vadd.xlane.f32.xlu1 %v1020_v42 }
 0x3ab   : > { %1214 = vrot.lane.b32.xlu0 %v2254_v0, %s2083_s28 }
 0x3b0   : > { %1055 = vrot.lane.b32.xlu1 %v2249_v59, %s2084_s20  ;;  %v881_v44 = vpop.xlane.xlu0 %880 }
 0x3b1   : > { %v742_v45 = vpop.xlane.xlu1 %741  ;;  %1991 = vrcp.f32 %v881_v44  ;;  %v896_v56 = vand.u32 2147483648, %v881_v44  ;;  %v894_v58 = vand.u32 2147483647, %v881_v44  ;;  %vm890_vm13 = vweird.f32 %v881_v44 }
 0x3b2   : > { %1993 = vrcp.f32 %v742_v45  ;;  %v757_v54 = vand.u32 2147483648, %v742_v45  ;;  %v755_v60 = vand.u32 2147483647, %v742_v45  ;;  %vm751_vm14 = vweird.f32 %v742_v45 }
 0x3b3   : > { %vm895_vm1 = vcmp.eq.f32.partialorder %v894_v58, 8.507059e+37 }
 0x3b4   : > { %v758_v1 = vor.u32 1.1754944e-38, %v757_v54  ;;  %vm756_vm2 = vcmp.eq.f32.partialorder %v755_v60, 8.507059e+37 }
 0x3b7   : > { %v1992_v46 = vpop.eup %1991 }
 0x3b8   : > { %v1994_v47 = vpop.eup %1993  ;;  %v886_v48 = vmul.f32 %v1992_v46, %v881_v44  ;;  %1076 = vrot.lane.b32.xlu1 %v2254_v0, %s2084_s20  ;;  %vm891_vm11 = vweird.f32 %v1992_v46  ;;  %v897_v0 = vor.u32 1.1754944e-38, %v896_v56 }
 0x3b9   : > { %v747_v49 = vmul.f32 %v1994_v47, %v742_v45  ;;  %vm752_vm12 = vweird.f32 %v1994_v47  ;;  %vm892_vm15 = vmor %vm890_vm13, %vm891_vm11 }
 0x3ba   : > { %v887_v50 = vsub.f32 1.0, %v886_v48  ;;  %vm753_vm0 = vmor %vm751_vm14, %vm752_vm12 }
 0x3bb   : > { %v748_v53 = vsub.f32 1.0, %v747_v49 }
 0x3bc   : > { %v888_v55 = vmul.f32 %v1992_v46, %v887_v50 }
 0x3bd   : > { %v749_v57 = vmul.f32 %v1994_v47, %v748_v53 }
 0x3be   : > { %v889_v61 = vadd.f32 %v1992_v46, %v888_v55 }
 0x3bf   : > { %v745_v62 = vpop.xlane.xlu1 %744  ;;  %v750_v63 = vadd.f32 %v1994_v47, %v749_v57 }
 0x3c0   : > { %1995 = vrcp.f32 %v745_v62  ;;  %1193 = vrot.lane.b32.xlu1 %v2249_v59, %s2083_s28  ;;  %v893_v5 = vsel %vm892_vm15, %v1992_v46, %v889_v61  ;;  %v772_v18 = vand.u32 2147483648, %v745_v62  ;;  %vm766_vm4 = vweird.f32 %v745_v62 }
 0x3c1   : > { %v754_v2 = vsel %vm753_vm0, %v1994_v47, %v750_v63  ;;  %v898_v7 = vsel %vm895_vm1, %v897_v0, %v893_v5 }
 0x3c2   : > { %v759_v6 = vsel %vm756_vm2, %v758_v1, %v754_v2  ;;  %v899_v9 = vmul.f32 %v2307_v3, %v898_v7  ;;  %v773_v21 = vor.u32 1.1754944e-38, %v772_v18 }
 0x3c3   : > { %v760_v8 = vmul.f32 %v2309_v4, %v759_v6  ;;  %v770_v4 = vand.u32 2147483647, %v745_v62 }
 0x3c4   : > { %v915_v11 = vpack.c.bf16 %v899_v9, %v899_v9 }
 0x3c5   : > { %v776_v10 = vpack.c.bf16 %v760_v8, %v760_v8  ;;  %vm771_vm6 = vcmp.eq.f32.partialorder %v770_v4, 8.507059e+37 }
 0x3c6   : > { %v1996_v12 = vpop.eup %1995  ;;  %1824 = vmatmul.msk.bf16.vlgmr.msrb.gmra.mxu2 %vm684_vm9, %v915_v11 }
 0x3c7   : > { %v762_v15 = vmul.f32 %v1996_v12, %v745_v62  ;;  %1820 = vmatmul.msk.bf16.vlgmr.msra.gmra.mxu3 %vm684_vm9, %v776_v10  ;;  %v884_v16 = vpop.xlane.xlu1 %883  ;;  %vm767_vm3 = vweird.f32 %v1996_v12 }
 0x3c8   : > { %1997 = vrcp.f32 %v884_v16  ;;  %953 = vmatpush.bf16.msra.mxu3 %v944_v13  ;;  %vm768_vm5 = vmor %vm766_vm4, %vm767_vm3  ;;  %v911_v31 = vand.u32 2147483648, %v884_v16  ;;  %vm905_vm11 = vweird.f32 %v884_v16  ;;  %v909_v32 = vand.u32 2147483647, %v884_v16 }
 0x3c9   : > { %v763_v59 = vsub.f32 1.0, %v762_v15 }
 0x3ca   : > { %v912_v35 = vor.u32 1.1754944e-38, %v911_v31  ;;  %vm910_vm13 = vcmp.eq.f32.partialorder %v909_v32, 8.507059e+37 }
 0x3cb   : > { %v764_v19 = vmul.f32 %v1996_v12, %v763_v59 }
 0x3cd   : > { %v765_v20 = vadd.f32 %v1996_v12, %v764_v19 }
 0x3ce   : > { %v1998_v3 = vpop.eup %1997 }
 0x3cf   : > { %v901_v22 = vmul.f32 %v1998_v3, %v884_v16  ;;  %v769_v24 = vsel %vm768_vm5, %v1996_v12, %v765_v20  ;;  %vm906_vm7 = vweird.f32 %v1998_v3 }
 0x3d0   : > { %v774_v25 = vsel %vm771_vm6, %v773_v21, %v769_v24  ;;  %vm907_vm12 = vmor %vm905_vm11, %vm906_vm7 }
 0x3d1   : > { %v902_v26 = vsub.f32 1.0, %v901_v22  ;;  %v775_v27 = vmul.f32 %v2315_v14, %v774_v25 }
 0x3d3   : > { %v903_v28 = vmul.f32 %v1998_v3, %v902_v26  ;;  %v777_v29 = vpack.c.bf16 %v775_v27, %v775_v27 }
 0x3d5   : > { %v904_v30 = vadd.f32 %v1998_v3, %v903_v28 }
 0x3d7   : > { %1821 = vmatmul.msk.bf16.vlgmr.msrb.gmra.mxu3 %vm684_vm9, %v777_v29  ;;  %v908_v33 = vsel %vm907_vm12, %v1998_v3, %v904_v30 }
 0x3d8   : > { %v913_v36 = vsel %vm910_vm13, %v912_v35, %v908_v33 }
 0x3d9   : > { %v914_v37 = vmul.f32 %v2320_v17, %v913_v36 }
 0x3db   : > { %v916_v38 = vpack.c.bf16 %v914_v37, %v914_v37 }
 0x3e1   : > { %v2359_v49 = vpop.xlane.xlu2 %1159 }
 0x3e2   : > { %v1185_v28 = vand.u32 2147483647, %v2359_v49 }
 0x3e7   : > { %1825 = vmatmul.msk.bf16.vlgmr.msra.gmra.mxu3 %vm684_vm9, %v916_v38 }
 0x402   : > { %v1019_v14 = vpop.xlane.xlu1 %1018 }
 0x403   : > { %1999 = vrcp.f32 %v1019_v14  ;;  %v1034_v54 = vand.u32 2147483648, %v1019_v14  ;;  %vm1028_vm15 = vweird.f32 %v1019_v14  ;;  %v1032_v55 = vand.u32 2147483647, %v1019_v14 }
 0x405   : > { %v1035_v60 = vor.u32 1.1754944e-38, %v1034_v54  ;;  %vm1033_vm1 = vcmp.eq.f32.partialorder %v1032_v55, 8.507059e+37 }
 0x409   : > { %v2000_v41 = vpop.eup %1999 }
 0x40a   : > { %v1022_v42 = vpop.xlane.xlu1 %1021  ;;  %v1024_v43 = vmul.f32 %v2000_v41, %v1019_v14  ;;  %v1157_v45 = vpop.xlane.xlu0 %1156  ;;  %vm1029_vm14 = vweird.f32 %v2000_v41 }
 0x40b   : > { %2001 = vrcp.f32 %v1022_v42  ;;  %vm1030_vm0 = vmor %vm1028_vm15, %vm1029_vm14  ;;  %v1049_v0 = vand.u32 2147483648, %v1022_v42  ;;  %vm1043_vm3 = vweird.f32 %v1022_v42  ;;  %v1047_v5 = vand.u32 2147483647, %v1022_v42 }
 0x40c   : > { %v1025_v44 = vsub.f32 1.0, %v1024_v43  ;;  %2003 = vrcp.f32 %v1157_v45  ;;  %vm1166_vm7 = vweird.f32 %v1157_v45  ;;  %v1170_v18 = vand.u32 2147483647, %v1157_v45 }
 0x40d   : > { %2005 = vrcp.f32 %v2359_v49  ;;  %v1050_v11 = vor.u32 1.1754944e-38, %v1049_v0  ;;  %vm1048_vm5 = vcmp.eq.f32.partialorder %v1047_v5, 8.507059e+37  ;;  %vm1181_vm14 = vweird.f32 %v2359_v49 }
 0x40e   : > { %v1026_v47 = vmul.f32 %v2000_v41, %v1025_v44  ;;  %vm1171_vm12 = vcmp.eq.f32.partialorder %v1170_v18, 8.507059e+37 }
 0x410   : > { %v1027_v50 = vadd.f32 %v2000_v41, %v1026_v47 }
 0x411   : > { %v2002_v46 = vpop.eup %2001 }
 0x412   : > { %v1039_v48 = vmul.f32 %v2002_v46, %v1022_v42  ;;  %v2004_v53 = vpop.eup %2003  ;;  %v1031_v56 = vsel %vm1030_vm0, %v2000_v41, %v1027_v50  ;;  %vm1044_vm2 = vweird.f32 %v2002_v46  ;;  %vm1186_vm0 = vcmp.eq.f32.partialorder %v1185_v28, 8.507059e+37 }
 0x413   : > { %v1162_v58 = vmul.f32 %v2004_v53, %v1157_v45  ;;  %v1036_v61 = vsel %vm1033_vm1, %v1035_v60, %v1031_v56  ;;  %v2006_v1 = vpop.eup %2005  ;;  %vm1045_vm4 = vmor %vm1043_vm3, %vm1044_vm2  ;;  %vm1167_vm6 = vweird.f32 %v2004_v53  ;;  %v1898_v60 = vld [vmem:[%s2190_s23] sm:$0xff]  ;;  %vm1264_vm1 = vcmask 195584  }
 0x414   : > { %v1040_v17 = vsub.f32 1.0, %v1039_v48  ;;  %v1037_v2 = vmul.f32 %v2331_v34, %v1036_v61  ;;  %v1177_v7 = vmul.f32 %v2006_v1, %v2359_v49  ;;  %v1172_v34 = vand.u32 2147483648, %v1157_v45  ;;  %vm1168_vm11 = vmor %vm1166_vm7, %vm1167_vm6 }
 0x415   : > { %v1163_v63 = vsub.f32 1.0, %v1162_v58  ;;  %vm1182_vm13 = vweird.f32 %v2006_v1  ;;  %v1899_v58 = vld [vmem:[%s2190_s23 + $0x8] sm:$0xff]  ;;  %s2493_s23 = sld [smem:[#allocation10_spill]] (!%p1869_p5) }
 0x416   : > { %v1041_v57 = vmul.f32 %v2002_v46, %v1040_v17  ;;  %v1053_v12 = vpack.c.bf16 %v1037_v2, %v1037_v2  ;;  %v1178_v15 = vsub.f32 1.0, %v1177_v7  ;;  %v1173_v22 = vor.u32 1.1754944e-38, %v1172_v34  ;;  %vm1183_vm15 = vmor %vm1181_vm14, %vm1182_vm13  ;;  %1295 = vmatpush.bf16.msra.mxu0 %v1899_v58  ;;  %v1969_v58 = vld [vmem:[%s2214_s24 + $0x1] ss:$0 sm:$0xff] }
 0x417   : > { %v1164_v9 = vmul.f32 %v2004_v53, %v1163_v63 }
 0x418   : > { %v1042_v62 = vadd.f32 %v2002_v46, %v1041_v57  ;;  %v1179_v20 = vmul.f32 %v2006_v1, %v1178_v15 }
 0x419   : > { %v1165_v16 = vadd.f32 %v2004_v53, %v1164_v9 }
 0x41a   : > { %v1046_v8 = vsel %vm1045_vm4, %v2002_v46, %v1042_v62  ;;  %v1180_v27 = vadd.f32 %v2006_v1, %v1179_v20  ;;  %1296 = vmatpush.bf16.msra.mxu0 %v1898_v60 }
 0x41b   : > { %v1051_v13 = vsel %vm1048_vm5, %v1050_v11, %v1046_v8  ;;  %v1169_v3 = vsel %vm1168_vm11, %v2004_v53, %v1165_v16  ;;  %v1968_v16 = vld [vmem:[%s2214_s24] ss:$0 sm:$0xff]  ;;  %vm1455_vm11 = vcmask 523264  }
 0x41c   : > { %v1052_v59 = vmul.f32 %v2335_v39, %v1051_v13  ;;  %v1174_v26 = vsel %vm1171_vm12, %v1173_v22, %v1169_v3  ;;  %v1187_v39 = vand.u32 2147483648, %v2359_v49  ;;  %v1184_v31 = vsel %vm1183_vm15, %v2006_v1, %v1180_v27 }
 0x41d   : > { %v1215_v19 = vpop.permute.xlu0 %1214  ;;  %v1175_v29 = vmul.f32 %v2338_v40, %v1174_v26  ;;  %v2088_v22 = vmov 32.0  }
 0x41e   : > { %v1220_v24 = vsel %vm783_vm10, %v1215_v19, 0  ;;  %v1054_v25 = vpack.c.bf16 %v1052_v59, %v1052_v59  ;;  %v1188_v33 = vor.u32 1.1754944e-38, %v1187_v39  ;;  %2007 = vrcp.f32 %v2088_v22 }
 0x41f   : > { %v1191_v35 = vpack.c.bf16 %v1175_v29, %v1175_v29 }
 0x420   : > { %v1189_v36 = vsel %vm1186_vm0, %v1188_v33, %v1184_v31 }
 0x421   : > { %v1190_v37 = vmul.f32 %v2324_v23, %v1189_v36 }
 0x422   : > { %v1056_v6 = vpop.permute.xlu1 %1055 }
 0x423   : > { %v1061_v10 = vsel %vm783_vm10, %v1056_v6, 0  ;;  %v1192_v38 = vpack.c.bf16 %v1190_v37, %v1190_v37 }
 0x424   : > { %1070 = vmatpush.bf16.msra.mxu2 %v1061_v10 }
 0x427   : > { %1828 = vmatmul.msk.bf16.vlgmr.msra.gmra.mxu2 %vm684_vm9, %v1053_v12 }
 0x42a   : > { %v1077_v4 = vpop.permute.xlu1 %1076 }
 0x42b   : > { %v1082_v21 = vsel %vm783_vm10, %v1077_v4, 0 }
 0x42c   : > { %1091 = vmatpush.bf16.msrb.mxu3 %v1082_v21 }
 0x42f   : > { %1829 = vmatmul.msk.bf16.vlgmr.msrb.gmra.mxu3 %vm684_vm9, %v1054_v25 }
 0x430   : > { %1229 = vmatpush.bf16.msra.mxu3 %v1220_v24  ;;  %v2008_v24 = vpop.eup %2007 }
 0x431   : > { %v1314_v25 = vmul.f32 32.0, %v2008_v24 }
 0x432   : > { %v1194_v30 = vpop.permute.xlu1 %1193 }
 0x433   : > { %v1199_v32 = vsel %vm783_vm10, %v1194_v30, 0  ;;  %vm1261_vm10 = vcmask 130048   ;;  %v1315_v26 = vsub.f32 1.0, %v1314_v25 }
 0x434   : > { %1208 = vmatpush.bf16.msrb.mxu2 %v1199_v32 }
 0x435   : > { %v1316_v27 = vmul.f32 %v2008_v24, %v1315_v26 }
 0x437   : > { %1832 = vmatmul.msk.bf16.vlgmr.msrb.gmra.mxu2 %vm684_vm9, %v1191_v35  ;;  %v1317_v39 = vadd.f32 %v2008_v24, %v1316_v27 }
 0x43f   : > { %1833 = vmatmul.msk.bf16.vlgmr.msra.gmra.mxu3 %vm684_vm9, %v1192_v38 }
 0x449   : > { %v934_v41 = vpop.f32.mrf.mxu2 }
 0x44a   : > { %v796_v14 = vpop.f32.mrf.mxu3 }
 0x451   : > { %v936_v42 = vpop.f32.mrf.mxu2 }
 0x452   : > { %v798_v40 = vpop.f32.mrf.mxu3  ;;  %v1900_v42 = vld [vmem:[%s2195_s26] sm:$0xff] }
 0x45a   : > { %v817_v43 = vpop.f32.mrf.mxu3 }
 0x462   : > { %v819_v44 = vpop.f32.mrf.mxu3 }
 0x46a   : > { %v955_v45 = vpop.f32.mrf.mxu3 }
 0x46b   : > { %v1950_v46 = vpack.i.bf16 %v955_v45, %v934_v41 }
 0x46d   : > { %1951 = vrot.lane.b32.xlu2 %v1950_v46, %s2085_s19 }
 0x472   : > { %v957_v47 = vpop.f32.mrf.mxu3 }
 0x4aa   : > { %v1072_v48 = vpop.f32.mrf.mxu2 }
 0x4b2   : > { %v1074_v49 = vpop.f32.mrf.mxu2  ;;  %v1093_v23 = vpop.f32.mrf.mxu3 }
 0x4b3   : > { %v1955_v50 = vpack.i.bf16 %v1093_v23, %v1072_v48 }
 0x4b5   : > { %1956 = vrot.lane.b32.xlu1 %v1955_v50, %s2086_s22 }
 0x4ba   : > { %v1095_v17 = vpop.f32.mrf.mxu3  ;;  %v1210_v53 = vpop.f32.mrf.mxu2 }
 0x4c2   : > { %v1212_v54 = vpop.f32.mrf.mxu2  ;;  %v1231_v55 = vpop.f32.mrf.mxu3 }
 0x4c3   : > { %v1960_v56 = vpack.i.bf16 %v1231_v55, %v1210_v53 }
 0x4c5   : > { %1961 = vrot.lane.b32.xlu1 %v1960_v56, %s2087_s18 }
 0x4c7   : > { %v1952_v62 = vpop.permute.xlu2 %1951 }
 0x4c8   : > { %v1954_v63 = vunpack.i.h.bf16 %v1952_v62  ;;  %v1953_v1 = vunpack.i.l.bf16 %v1952_v62 }
 0x4ca   : > { %v1233_v57 = vpop.f32.mrf.mxu3  ;;  %v1260_v6 = vsel %vm684_vm9, %v817_v43, %v1954_v63  ;;  %v1259_v7 = vsel %vm684_vm9, %v796_v14, %v1953_v1  ;;  %vm1318_vm9 = vweird.f32 %v2008_v24  ;;  %v1901_v14 = vld [vmem:[%s2195_s26 + $0x8] sm:$0xff]  ;;  %v1970_v63 = vld [vmem:[%s2214_s24 + $0x2] ss:$0 sm:$0xff] }
 0x4cb   : > { %1394 = vmatpush.bf16.msra.mxu1 %v1901_v14 }
 0x4cf   : > { %1395 = vmatpush.bf16.msra.mxu1 %v1900_v42 }
 0x527   : > { %v1957_v61 = vpop.permute.xlu1 %1956 }
 0x528   : > { %v1959_v0 = vunpack.i.h.bf16 %v1957_v61  ;;  %v1958_v2 = vunpack.i.l.bf16 %v1957_v61 }
 0x52a   : > { %v1263_v10 = vsel %vm1261_vm10, %v1260_v6, %v1959_v0  ;;  %v1262_v11 = vsel %vm1261_vm10, %v1259_v7, %v1958_v2 }
 0x537   : > { %v1962_v5 = vpop.permute.xlu1 %1961 }
 0x538   : > { %v1964_v8 = vunpack.i.h.bf16 %v1962_v5  ;;  %v1963_v9 = vunpack.i.l.bf16 %v1962_v5 }
 0x53a   : > { %v1266_v12 = vsel %vm1264_vm1, %v1263_v10, %v1964_v8  ;;  %v1265_v13 = vsel %vm1264_vm1, %v1262_v11, %v1963_v9  ;;  %v1905_v8 = vld [vmem:[%s2200_s29 + $0x18] sm:$0xff]  ;;  %v1904_v9 = vld [vmem:[%s2200_s29 + $0x10] sm:$0xff]  ;;  %v1903_v10 = vld [vmem:[%s2200_s29 + $0x8] sm:$0xff] }
 0x53b   : > { %v1267_v15 = vpack.c.bf16 %v1266_v12, %v1265_v13  ;;  %1463 = vmatpush.bf16.msra.mxu2 %v1905_v8  ;;  %v1971_v11 = vld [vmem:[%s554_s21] ss:$0 sm:$0xff] }
 0x53c   : > { %v1902_v12 = vld [vmem:[%s2200_s29] sm:$0xff] }
 0x53d   : > { %1842 = vmatmul.msk.bf16.vlgmr.msra.gmra.mxu0 %vm651_vm8, %v1267_v15 }
 0x53f   : > { %1464 = vmatpush.bf16.msra.mxu2 %v1904_v9  ;;  %v1974_v9 = vld [vmem:[%s2214_s24 + $0x5] ss:$0 sm:$0xff] }
 0x543   : > { %1465 = vmatpush.bf16.msra.mxu2 %v1903_v10 }
 0x547   : > { %1466 = vmatpush.bf16.msra.mxu2 %v1902_v12 }
 0x5ba   : > { %v1298_v34 = vpop.f32.mrf.mxu0 }
 0x5bb   : > { %v1299_v59 = vadd.f32 %v1968_v16, %v1298_v34 }
 0x5bd   : > { %v1303_v18 = vadd.f32 %v1299_v59, %v2237_v51  ;;  %v2389_v51 = vsel %vm1318_vm9, %v2008_v24, %v1317_v39 }
 0x5bf   : > { %v1307_v19 = vsel %vm651_vm8, %v1303_v18, 0.0 }
 0x5c0   : > { %1308 = vadd.xlane.f32.xlu1 %v1307_v19 }
 0x5c2   : > { %v1300_v4 = vpop.f32.mrf.mxu0 }
 0x5c3   : > { %v1301_v20 = vadd.f32 %v1968_v16, %v1300_v4 }
 0x5c5   : > { %v1304_v3 = vadd.f32 %v1301_v20, %v2239_v52 }
 0x5c7   : > { %v1310_v21 = vsel %vm651_vm8, %v1304_v3, 0.0 }
 0x5c8   : > { %1311 = vadd.xlane.f32.xlu0 %v1310_v21 }
 0x633   : > { %v1309_v28 = vpop.xlane.xlu1 %1308 }
 0x634   : > { %v1320_v29 = vmul.f32 %v2389_v51, %v1309_v28 }
 0x636   : > { %v1322_v30 = vsub.f32 %v1303_v18, %v1320_v29 }
 0x638   : > { %v1324_v52 = vmul.f32 %v1322_v30, %v1322_v30 }
 0x63a   : > { %v1326_v31 = vsel %vm651_vm8, %v1324_v52, 0.0 }
 0x63b   : > { %v1312_v32 = vpop.xlane.xlu0 %1311  ;;  %1327 = vadd.xlane.f32.xlu2 %v1326_v31 }
 0x63c   : > { %v1321_v33 = vmul.f32 %v2389_v51, %v1312_v32 }
 0x63e   : > { %v1323_v35 = vsub.f32 %v1304_v3, %v1321_v33  ;;  %v1972_v33 = vld [vmem:[%s2214_s24 + $0x3] ss:$0 sm:$0xff] }
 0x640   : > { %v1325_v36 = vmul.f32 %v1323_v35, %v1323_v35 }
 0x642   : > { %v1329_v37 = vsel %vm651_vm8, %v1325_v36, 0.0 }
 0x643   : > { %1330 = vadd.xlane.f32.xlu1 %v1329_v37 }
 0x6ae   : > { %v1328_v38 = vpop.xlane.xlu2 %1327 }
 0x6af   : > { %v1332_v41 = vmul.f32 %v1328_v38, %v2389_v51 }
 0x6b1   : > { %v1334_v40 = vadd.f32 1e-12, %v1332_v41 }
 0x6b3   : > { %2009 = vrsqrt.f32 %v1334_v40  ;;  %vm1342_vm3 = vweird.f32 %v1334_v40 }
 0x6b6   : > { %v1331_v43 = vpop.xlane.xlu1 %1330 }
 0x6b7   : > { %v1333_v44 = vmul.f32 %v1331_v43, %v2389_v51 }
 0x6b9   : > { %v2010_v45 = vpop.eup %2009  ;;  %v1335_v46 = vadd.f32 1e-12, %v1333_v44 }
 0x6ba   : > { %v1337_v47 = vmul.f32 %v2010_v45, %v1334_v40  ;;  %vm1343_vm2 = vweird.f32 %v2010_v45 }
 0x6bb   : > { %2011 = vrsqrt.f32 %v1335_v46  ;;  %vm1344_vm4 = vmor %vm1342_vm3, %vm1343_vm2  ;;  %vm1352_vm6 = vweird.f32 %v1335_v46 }
 0x6bc   : > { %v1338_v48 = vmul.f32 %v2010_v45, %v1337_v47 }
 0x6be   : > { %v1339_v49 = vmul.f32 0.5, %v1338_v48 }
 0x6c0   : > { %v1340_v23 = vsub.f32 1.5, %v1339_v49 }
 0x6c1   : > { %v2012_v50 = vpop.eup %2011 }
 0x6c2   : > { %v1341_v17 = vmul.f32 %v2010_v45, %v1340_v23  ;;  %v1347_v53 = vmul.f32 %v2012_v50, %v1335_v46  ;;  %vm1353_vm5 = vweird.f32 %v2012_v50 }
 0x6c3   : > { %vm1354_vm7 = vmor %vm1352_vm6, %vm1353_vm5 }
 0x6c4   : > { %v1348_v54 = vmul.f32 %v2012_v50, %v1347_v53  ;;  %v1345_v55 = vsel %vm1344_vm4, %v2010_v45, %v1341_v17 }
 0x6c5   : > { %v1356_v60 = vmul.f32 %v1345_v55, %v1322_v30 }
 0x6c6   : > { %v1349_v56 = vmul.f32 0.5, %v1348_v54 }
 0x6c7   : > { %v1359_v1 = vmul.f32 %v1969_v58, %v1356_v60 }
 0x6c8   : > { %v1350_v57 = vsub.f32 1.5, %v1349_v56 }
 0x6c9   : > { %v1362_v5 = vadd.f32 %v1970_v63, %v1359_v1 }
 0x6ca   : > { %v1351_v61 = vmul.f32 %v2012_v50, %v1350_v57 }
 0x6cc   : > { %v1355_v62 = vsel %vm1354_vm7, %v2012_v50, %v1351_v61 }
 0x6cd   : > { %v1357_v0 = vmul.f32 %v1355_v62, %v1323_v35 }
 0x6cf   : > { %v1360_v2 = vmul.f32 %v1969_v58, %v1357_v0 }
 0x6d1   : > { %v1363_v6 = vadd.f32 %v1970_v63, %v1360_v2 }
 0x6d3   : > { %v1364_v7 = vpack.c.bf16 %v1363_v6, %v1362_v5 }
 0x6d5   : > { %1851 = vmatmul.msk.bf16.vlgmr.msra.gmra.mxu1 %vm651_vm8, %v1364_v7 }
 0x752   : > { %v1397_v13 = vpop.f32.mrf.mxu1 }
 0x753   : > { %v1398_v15 = vadd.f32 %v1971_v11, %v1397_v13 }
 0x755   : > { %v1404_v16 = vmul.f32 0.044715, %v1398_v15  ;;  %v1402_v28 = vmul.f32 0.5, %v1398_v15 }
 0x757   : > { %v1406_v34 = vmul.f32 %v1404_v16, %v1398_v15 }
 0x759   : > { %v1408_v59 = vmul.f32 %v1406_v34, %v1398_v15 }
 0x75a   : > { %v1399_v18 = vpop.f32.mrf.mxu1 }
 0x75b   : > { %v1410_v19 = vadd.f32 %v1408_v59, %v1398_v15  ;;  %v1400_v4 = vadd.f32 %v1971_v11, %v1399_v18 }
 0x75d   : > { %v1405_v20 = vmul.f32 0.044715, %v1400_v4  ;;  %v1412_v3 = vmul.f32 0.7978846, %v1410_v19  ;;  %v1403_v29 = vmul.f32 0.5, %v1400_v4 }
 0x75f   : > { %v1407_v21 = vmul.f32 %v1405_v20, %v1400_v4  ;;  %2013 = vtanh.f32 %v1412_v3 }
 0x761   : > { %v1409_v22 = vmul.f32 %v1407_v21, %v1400_v4 }
 0x763   : > { %v1411_v24 = vadd.f32 %v1409_v22, %v1400_v4 }
 0x765   : > { %v1413_v25 = vmul.f32 0.7978846, %v1411_v24  ;;  %v2014_v26 = vpop.eup %2013 }
 0x766   : > { %v1416_v27 = vadd.f32 1.0, %v2014_v26 }
 0x767   : > { %2015 = vtanh.f32 %v1413_v25 }
 0x768   : > { %v1418_v52 = vmul.f32 %v1416_v27, %v1402_v28 }
 0x76d   : > { %v2016_v39 = vpop.eup %2015 }
 0x76e   : > { %v1417_v30 = vadd.f32 1.0, %v2016_v39 }
 0x770   : > { %v1419_v31 = vmul.f32 %v1417_v30, %v1403_v29 }
 0x772   : > { %v1420_v32 = vpack.c.bf16 %v1419_v31, %v1418_v52 }
 0x774   : > { %1868 = vmatmul.msk.bf16.vlgmr.msra.gmra.mxu2 %vm1455_vm11, %v1420_v32 }
 0x7f7   : > { %v1468_v35 = vpop.f32.mrf.mxu2 }
 0x7f8   : > { %v1469_v36 = vadd.f32 %v1972_v33, %v1468_v35 }
 0x7fa   : > { %v1473_v37 = vadd.f32 %v1469_v36, %v1362_v5 }
 0x7fc   : > { %v1477_v38 = vsel %vm651_vm8, %v1473_v37, 0.0 }
 0x7fd   : > { %1478 = vadd.xlane.f32.xlu0 %v1477_v38 }
 0x7ff   : > { %v1470_v14 = vpop.f32.mrf.mxu2 }
 0x800   : > { %v1471_v41 = vadd.f32 %v1972_v33, %v1470_v14 }
 0x802   : > { %v1474_v40 = vadd.f32 %v1471_v41, %v1363_v6  ;;  %v1973_v6 = vld [vmem:[%s2214_s24 + $0x4] ss:$0 sm:$0xff] }
 0x804   : > { %v1480_v42 = vsel %vm651_vm8, %v1474_v40, 0.0 }
 0x805   : > { %1481 = vadd.xlane.f32.xlu2 %v1480_v42 }
 0x870   : > { %v1479_v43 = vpop.xlane.xlu0 %1478 }
 0x871   : > { %v1483_v44 = vmul.f32 %v1479_v43, %v2389_v51 }
 0x873   : > { %v1485_v45 = vsub.f32 %v1473_v37, %v1483_v44 }
 0x875   : > { %v1487_v46 = vmul.f32 %v1485_v45, %v1485_v45 }
 0x877   : > { %v1489_v47 = vsel %vm651_vm8, %v1487_v46, 0.0 }
 0x878   : > { %v1482_v48 = vpop.xlane.xlu2 %1481  ;;  %1490 = vadd.xlane.f32.xlu1 %v1489_v47 }
 0x879   : > { %v1484_v49 = vmul.f32 %v1482_v48, %v2389_v51 }
 0x87b   : > { %v1486_v23 = vsub.f32 %v1474_v40, %v1484_v49 }
 0x87d   : > { %v1488_v50 = vmul.f32 %v1486_v23, %v1486_v23 }
 0x87f   : > { %v1492_v17 = vsel %vm651_vm8, %v1488_v50, 0.0 }
 0x880   : > { %1493 = vadd.xlane.f32.xlu0 %v1492_v17 }
 0x8eb   : > { %v1491_v53 = vpop.xlane.xlu1 %1490 }
 0x8ec   : > { %v1495_v54 = vmul.f32 %v1491_v53, %v2389_v51 }
 0x8ee   : > { %v1497_v55 = vadd.f32 1e-12, %v1495_v54 }
 0x8f0   : > { %2017 = vrsqrt.f32 %v1497_v55  ;;  %vm1505_vm13 = vweird.f32 %v1497_v55 }
 0x8f3   : > { %v1494_v56 = vpop.xlane.xlu0 %1493 }
 0x8f4   : > { %v1496_v57 = vmul.f32 %v1494_v56, %v2389_v51 }
 0x8f6   : > { %v2018_v58 = vpop.eup %2017  ;;  %v1498_v60 = vadd.f32 1e-12, %v1496_v57 }
 0x8f7   : > { %v1500_v61 = vmul.f32 %v2018_v58, %v1497_v55  ;;  %vm1506_vm12 = vweird.f32 %v2018_v58 }
 0x8f8   : > { %2019 = vrsqrt.f32 %v1498_v60  ;;  %vm1507_vm14 = vmor %vm1505_vm13, %vm1506_vm12  ;;  %vm1515_vm0 = vweird.f32 %v1498_v60 }
 0x8f9   : > { %v1501_v62 = vmul.f32 %v2018_v58, %v1500_v61 }
 0x8fb   : > { %v1502_v63 = vmul.f32 0.5, %v1501_v62 }
 0x8fd   : > { %v1503_v1 = vsub.f32 1.5, %v1502_v63 }
 0x8fe   : > { %v2020_v0 = vpop.eup %2019 }
 0x8ff   : > { %v1504_v2 = vmul.f32 %v2018_v58, %v1503_v1  ;;  %v1510_v5 = vmul.f32 %v2020_v0, %v1498_v60  ;;  %vm1516_vm15 = vweird.f32 %v2020_v0 }
 0x900   : > { %vm1517_vm10 = vmor %vm1515_vm0, %vm1516_vm15 }
 0x901   : > { %v1508_v7 = vsel %vm1507_vm14, %v2018_v58, %v1504_v2  ;;  %v1511_v8 = vmul.f32 %v2020_v0, %v1510_v5 }
 0x902   : > { %v1519_v10 = vmul.f32 %v1508_v7, %v1485_v45 }
 0x903   : > { %v1512_v11 = vmul.f32 0.5, %v1511_v8 }
 0x904   : > { %v1522_v12 = vmul.f32 %v1973_v6, %v1519_v10 }
 0x905   : > { %v1513_v13 = vsub.f32 1.5, %v1512_v11 }
 0x906   : > { %v1525_v15 = vadd.f32 %v1974_v9, %v1522_v12 }
 0x907   : > { %v1514_v16 = vmul.f32 %v2020_v0, %v1513_v13 }
 0x908   : > { %1527 = vst.msk [vmem:[#allocation2] sm:$0xff] %vm651_vm8, %v1525_v15 }
 0x909   : > { %v1518_v34 = vsel %vm1517_vm10, %v2020_v0, %v1514_v16 }
 0x90a   : > { %v1520_v59 = vmul.f32 %v1518_v34, %v1486_v23 }
 0x90c   : > { %v1523_v18 = vmul.f32 %v1973_v6, %v1520_v59  ;;  %1532 = sbr.rel (%p1869_p5) target bundleno = 2893 (0xb4d), region = 84 }
 0x90e   : > { %v1526_v19 = vadd.f32 %v1974_v9, %v1523_v18 }
 0x910   : > { %1528 = vst.msk [vmem:[#allocation2 + $0x8] sm:$0xff] %vm651_vm8, %v1526_v19 }
 0x911   : > { %v1907_v4 = vld [vmem:[%s2477_s10 + $0x8] sm:$0xff]  ;;  %v1906_v20 = vld [vmem:[%s2477_s10] sm:$0xff]  ;;  %v1533_v3 = vpack.c.bf16 %v1526_v19, %v1525_v15 }
 0x912   : > { %1561 = vmatpush.bf16.msra.mxu0 %v1907_v4  ;;  %v2021_v21 = vld [vmem:[%s2478_s11] ss:$0 sm:$0xff]  ;;  %v1909_v56 = vld [vmem:[%s2492_s4 + $0x8] sm:$0xff]  ;;  %v2023_v4 = vld [vmem:[%s2478_s11 + $0x2] ss:$0 sm:$0xff] }
 0x913   : > { %1669 = vmatpush.bf16.msra.mxu1 %v1909_v56  ;;  %v1908_v58 = vld [vmem:[%s2492_s4] sm:$0xff] }
 0x916   : > { %1562 = vmatpush.bf16.msra.mxu0 %v1906_v20 }
 0x917   : > { %1670 = vmatpush.bf16.msra.mxu1 %v1908_v58 }
 0x919   : > { %1878 = vmatmul.msk.bf16.vlgmr.msra.gmra.mxu0 %vm651_vm8, %v1533_v3 }
 0x996   : > { %v1564_v22 = vpop.f32.mrf.mxu0 }
 0x997   : > { %v1565_v24 = vadd.f32 %v2021_v21, %v1564_v22 }
 0x999   : > { %v1571_v25 = vmul.f32 0.044715, %v1565_v24  ;;  %v1569_v37 = vmul.f32 0.5, %v1565_v24 }
 0x99b   : > { %v1573_v26 = vmul.f32 %v1571_v25, %v1565_v24 }
 0x99d   : > { %v1575_v27 = vmul.f32 %v1573_v26, %v1565_v24 }
 0x99e   : > { %v1566_v39 = vpop.f32.mrf.mxu0 }
 0x99f   : > { %v1567_v28 = vadd.f32 %v2021_v21, %v1566_v39  ;;  %v1577_v29 = vadd.f32 %v1575_v27, %v1565_v24  ;;  %v2024_v24 = vld [vmem:[%s2493_s23] ss:$0 sm:$0xff] }
 0x9a1   : > { %v1572_v30 = vmul.f32 0.044715, %v1567_v28  ;;  %v1579_v52 = vmul.f32 0.7978846, %v1577_v29  ;;  %v1570_v42 = vmul.f32 0.5, %v1567_v28 }
 0x9a3   : > { %2025 = vtanh.f32 %v1579_v52  ;;  %v1574_v31 = vmul.f32 %v1572_v30, %v1567_v28 }
 0x9a5   : > { %v1576_v32 = vmul.f32 %v1574_v31, %v1567_v28 }
 0x9a7   : > { %v1578_v33 = vadd.f32 %v1576_v32, %v1567_v28 }
 0x9a9   : > { %v2026_v35 = vpop.eup %2025  ;;  %v1580_v36 = vmul.f32 0.7978846, %v1578_v33 }
 0x9aa   : > { %v1583_v38 = vadd.f32 1.0, %v2026_v35 }
 0x9ab   : > { %2027 = vtanh.f32 %v1580_v36 }
 0x9ac   : > { %v1585_v14 = vmul.f32 %v1583_v38, %v1569_v37 }
 0x9ae   : > { %v1589_v41 = vsel %vm651_vm8, %v1585_v14, 0.0 }
 0x9af   : > { %1590 = vadd.xlane.f32.xlu0 %v1589_v41 }
 0x9b1   : > { %v2028_v40 = vpop.eup %2027 }
 0x9b2   : > { %v1584_v43 = vadd.f32 1.0, %v2028_v40 }
 0x9b4   : > { %v1586_v44 = vmul.f32 %v1584_v43, %v1570_v42 }
 0x9b6   : > { %v1592_v45 = vsel %vm651_vm8, %v1586_v44, 0.0 }
 0x9b7   : > { %1593 = vadd.xlane.f32.xlu0 %v1592_v45 }
 0xa22   : > { %v1591_v46 = vpop.xlane.xlu0 %1590 }
 0xa23   : > { %v1595_v47 = vmul.f32 %v1591_v46, %v2389_v51 }
 0xa25   : > { %v1597_v48 = vsub.f32 %v1585_v14, %v1595_v47 }
 0xa27   : > { %v1599_v49 = vmul.f32 %v1597_v48, %v1597_v48 }
 0xa29   : > { %v1601_v23 = vsel %vm651_vm8, %v1599_v49, 0.0 }
 0xa2a   : > { %1602 = vadd.xlane.f32.xlu1 %v1601_v23  ;;  %v1594_v50 = vpop.xlane.xlu0 %1593 }
 0xa2b   : > { %v1596_v17 = vmul.f32 %v1594_v50, %v2389_v51 }
 0xa2d   : > { %v1598_v53 = vsub.f32 %v1586_v44, %v1596_v17 }
 0xa2f   : > { %v1600_v54 = vmul.f32 %v1598_v53, %v1598_v53 }
 0xa31   : > { %v1604_v55 = vsel %vm651_vm8, %v1600_v54, 0.0 }
 0xa32   : > { %1605 = vadd.xlane.f32.xlu1 %v1604_v55 }
 0xa9d   : > { %v1603_v57 = vpop.xlane.xlu1 %1602 }
 0xa9e   : > { %v1607_v60 = vmul.f32 %v1603_v57, %v2389_v51 }
 0xaa0   : > { %v1609_v61 = vadd.f32 1e-12, %v1607_v60 }
 0xaa2   : > { %2029 = vrsqrt.f32 %v1609_v61  ;;  %vm1617_vm9 = vweird.f32 %v1609_v61 }
 0xaa5   : > { %v1606_v62 = vpop.xlane.xlu1 %1605 }
 0xaa6   : > { %v1608_v63 = vmul.f32 %v1606_v62, %v2389_v51  ;;  %v2022_v51 = vld [vmem:[%s2478_s11 + $0x1] ss:$0 sm:$0xff] }
 0xaa8   : > { %v2030_v1 = vpop.eup %2029  ;;  %v1610_v0 = vadd.f32 1e-12, %v1608_v63 }
 0xaa9   : > { %v1612_v2 = vmul.f32 %v2030_v1, %v1609_v61  ;;  %vm1618_vm1 = vweird.f32 %v2030_v1 }
 0xaaa   : > { %2031 = vrsqrt.f32 %v1610_v0  ;;  %vm1619_vm2 = vmor %vm1617_vm9, %vm1618_vm1  ;;  %vm1627_vm4 = vweird.f32 %v1610_v0 }
 0xaab   : > { %v1613_v5 = vmul.f32 %v2030_v1, %v1612_v2 }
 0xaad   : > { %v1614_v6 = vmul.f32 0.5, %v1613_v5 }
 0xaaf   : > { %v1615_v7 = vsub.f32 1.5, %v1614_v6 }
 0xab0   : > { %v2032_v8 = vpop.eup %2031 }
 0xab1   : > { %v1616_v9 = vmul.f32 %v2030_v1, %v1615_v7  ;;  %v1622_v10 = vmul.f32 %v2032_v8, %v1610_v0  ;;  %vm1628_vm3 = vweird.f32 %v2032_v8 }
 0xab2   : > { %vm1629_vm5 = vmor %vm1627_vm4, %vm1628_vm3 }
 0xab3   : > { %v1623_v11 = vmul.f32 %v2032_v8, %v1622_v10  ;;  %v1620_v13 = vsel %vm1619_vm2, %v2030_v1, %v1616_v9 }
 0xab4   : > { %v1631_v16 = vmul.f32 %v1620_v13, %v1597_v48 }
 0xab5   : > { %v1624_v12 = vmul.f32 0.5, %v1623_v11 }
 0xab6   : > { %v1634_v19 = vmul.f32 %v2022_v51, %v1631_v16 }
 0xab7   : > { %v1625_v15 = vsub.f32 1.5, %v1624_v12 }
 0xab8   : > { %v1637_v3 = vadd.f32 %v2023_v4, %v1634_v19 }
 0xab9   : > { %v1626_v34 = vmul.f32 %v2032_v8, %v1625_v15 }
 0xabb   : > { %v1630_v59 = vsel %vm1629_vm5, %v2032_v8, %v1626_v34 }
 0xabc   : > { %v1632_v18 = vmul.f32 %v1630_v59, %v1598_v53 }
 0xabe   : > { %v1635_v20 = vmul.f32 %v2022_v51, %v1632_v18 }
 0xac0   : > { %v1638_v21 = vadd.f32 %v2023_v4, %v1635_v20 }
 0xac2   : > { %v1639_v22 = vpack.c.bf16 %v1638_v21, %v1637_v3 }
 0xac4   : > { %1887 = vmatmul.msk.bf16.vlgmr.msra.gmra.mxu1 %vm651_vm8, %v1639_v22 }
 0xb41   : > { %v1672_v25 = vpop.f32.mrf.mxu1 }
 0xb42   : > { %v1673_v26 = vadd.f32 %v2024_v24, %v1672_v25 }
 0xb44   : > { %1677 = vst [vmem:[#allocation3] sm:$0xff] %v1673_v26 }
 0xb49   : > { %v1674_v27 = vpop.f32.mrf.mxu1 }
 0xb4a   : > { %v1675_v39 = vadd.f32 %v2024_v24, %v1674_v27 }
 0xb4c   : > { %1678 = vst [vmem:[#allocation3 + $0x8] sm:$0xff] %v1675_v39 }
 0xb4d PF: > { %p1914_p6 = scmp.eq.s32.totalorder %s2172_s30, 1  ;;  %s2089_s26 = smov [#allocation3]  }
 0xb4e   : > { %s1684_s29 = sshll.u32 %s2089_s26, 4  ;;  %s2494_s24 = sld [smem:[#allocation11_spill]]  ;;  %s1685_s29 = int_to_ptr.vmem [resolvable:$true] %s1684_s29 }
 0xb4f   : > { %s2090_s17 = smov 128  }
 0xb54   : > { %s1686_s16 = sshll.u32 %s2494_s24, 4  ;;  %s1687_s16 = int_to_ptr.hbm [resolvable:$true] %s1686_s16 }
 0xb55   : > { %1911 = dma.vmem_to_hbm [thread:$0]  (%p1914_p6), %s1685_s29, 256, %s1687_s16, [#allocation4], %s2090_s17, %s2090_s17, %s2085_s19  }
 0xb56   : > { %2066 = dma.done.wait (%p1914_p6), [#allocation4], 256  }
 0xb57   : > { %2068 = vsyncadd (%p1914_p6), [#allocation4], 4294967040 }
 0xb58 PF: > { %s2495_s13 = sld [smem:[#allocation6_spill]] }
 0xb5e   : > { %s25_s29 = sadd.s32 1, %s2495_s13  }
 0xb5f   : > { %p22_p7 = scmp.ge.s32.totalorder %s25_s29, 4  }
 0xb61   :  { %24 = sbr.rel (!%p22_p7) target bundleno = 7 (0x7), region = 129 }
 0xb66   :  { %1703 = vsyncpa [#allocation4], 1 }
 0xb67   :  { %1705 = vsyncpa [#allocation4 + $0x1], 1 }

</bundles_post_ra>
